<compile_context>
chip_gen: v7x
topology: tpu7x:2x2x1
jax: 0.10.0
libtpu: 0.0.40
codegen_flags: <defaults>
</compile_context>

<pallas_src>
import math
import jax
import jax.numpy as jnp
from jax.experimental import pallas as pl
from jax.experimental.pallas import tpu as pltpu


# ------------------------------ Fused kernel ---------------------------------
def make_fused_kernel(num_layers, T, B, H):
    """Build the fused kernel for static (num_layers, T, B_pad, H)."""

    def kernel(*refs):
        # refs layout: x_flat, (w_ih_t, w_hh_t, b) * num_layers, w1, b1, w2, b2, out
        x_ref = refs[0]
        lstm_refs = [
            (refs[1 + 3 * l], refs[2 + 3 * l], refs[3 + 3 * l]) for l in range(num_layers)
        ]
        w1_ref, b1_ref, w2_ref, b2_ref = refs[1 + 3 * num_layers: 5 + 3 * num_layers]
        o_ref = refs[5 + 3 * num_layers]

        # Time-major, batch-flattened layer input: (T*B, Din_l), VMEM-resident.
        seq = x_ref[...]
        h_last = None
        for l, (wih_ref, whh_ref, b_ref) in enumerate(lstm_refs):
            # Hoisted input projection for ALL timesteps: one well-shaped MXU
            # matmul (T*B, Din)@(Din, 4H), bias folded in once (not per step).
            xg = (
                jnp.dot(seq, wih_ref[...], preferred_element_type=jnp.float32)
                + b_ref[...]
            )  # (T*B, 4H), gate order i|f|g|o
            whh = whh_ref[...]  # (H, 4H), loaded once per layer
            h = jnp.zeros((B, H), jnp.float32)
            c = jnp.zeros((B, H), jnp.float32)
            hs = []
            for t in range(T):  # fully unrolled; static indices, no grid overhead
                # Only the recurrent matmul remains on the serial critical path.
                gates = xg[t * B:(t + 1) * B, :] + jnp.dot(
                    h, whh, preferred_element_type=jnp.float32
                )  # (B, 4H)
                i = jax.nn.sigmoid(gates[:, 0 * H:1 * H])
                f = jax.nn.sigmoid(gates[:, 1 * H:2 * H])
                g = jnp.tanh(gates[:, 2 * H:3 * H])
                o = jax.nn.sigmoid(gates[:, 3 * H:4 * H])
                c = f * c + i * g
                h = o * jnp.tanh(c)
                if l < num_layers - 1:
                    hs.append(h)
            if l < num_layers - 1:
                # Inter-layer sequence stays in VMEM as a value; time-major flat.
                seq = jnp.concatenate(hs, axis=0)  # (T*B, H)
            h_last = h  # == output[:, -1, :] == hn[-1] for the last layer

        # Fused MLP head: fc_1 -> ReLU -> fc_2 (output padded to 128 lanes).
        z = jnp.dot(h_last, w1_ref[...], preferred_element_type=jnp.float32) + b1_ref[...]
        z = jnp.maximum(z, 0.0)
        o_ref[...] = (
            jnp.dot(z, w2_ref[...], preferred_element_type=jnp.float32) + b2_ref[...]
        )

    return kernel


# ------------------------------- Full forward ---------------------------------
@jax.jit
def lstm_regression_forward(x_btd, params):
    """x_btd: (B, T, input_size), batch_first like PyTorch."""
    B, T, Din = x_btd.shape
    H = params["lstm"][0][1].shape[0]
    out_size = params["w2"].shape[1]
    num_layers = len(params["lstm"])

    B_pad = max(8, ((B + 7) // 8) * 8)   # full sublanes
    OUT_PAD = 128                        # lane-dense final store

    # batch_first -> time-major, pad batch to 8 sublanes, flatten to (T*B_pad, Din).
    x = jnp.transpose(x_btd, (1, 0, 2)).astype(jnp.float32)           # (T, B, Din)
    x = jnp.pad(x, ((0, 0), (0, B_pad - B), (0, 0)))                  # (T, B_pad, Din)
    x_flat = x.reshape(T * B_pad, Din)

    # Pad fc_2 to 128 output lanes (zeros); sliced back after the kernel.
    w2p = jnp.pad(params["w2"].astype(jnp.float32), ((0, 0), (0, OUT_PAD - out_size)))
    b2p = jnp.pad(params["b2"].astype(jnp.float32), ((0, 0), (0, OUT_PAD - out_size)))

    flat_lstm = []
    for (w_ih_t, w_hh_t, b) in params["lstm"]:
        flat_lstm += [w_ih_t, w_hh_t, b]

    kernel = make_fused_kernel(num_layers, T, B_pad, H)
    out_padded = pl.pallas_call(
        kernel,
        out_shape=jax.ShapeDtypeStruct((B_pad, OUT_PAD), jnp.float32),
    )(x_flat, *flat_lstm, params["w1"], params["b1"], w2p, b2p)

    return out_padded[:B, :out_size]


# ------------------------------ Parameter init ---------------------------------
def init_params(key, output_size, input_size, hidden_size, num_layers):
    params = {"lstm": []}
    H = hidden_size
    stdv = 1.0 / math.sqrt(H)
    for layer in range(num_layers):
        din = input_size if layer == 0 else H
        key, k1, k2, k3, k4 = jax.random.split(key, 5)
        w_ih = jax.random.uniform(k1, (4 * H, din), jnp.float32, -stdv, stdv)
        w_hh = jax.random.uniform(k2, (4 * H, H), jnp.float32, -stdv, stdv)
        b_ih = jax.random.uniform(k3, (4 * H,), jnp.float32, -stdv, stdv)
        b_hh = jax.random.uniform(k4, (4 * H,), jnp.float32, -stdv, stdv)
        # Pre-transposed weights, combined bias (b_ih + b_hh).
        params["lstm"].append((w_ih.T, w_hh.T, (b_ih + b_hh).reshape(1, 4 * H)))
    key, k1, k2, k3, k4 = jax.random.split(key, 5)
    s1 = 1.0 / math.sqrt(H)
    params["w1"] = jax.random.uniform(k1, (H, 128), jnp.float32, -s1, s1)
    params["b1"] = jax.random.uniform(k2, (1, 128), jnp.float32, -s1, s1)
    s2 = 1.0 / math.sqrt(128)
    params["w2"] = jax.random.uniform(k3, (128, output_size), jnp.float32, -s2, s2)
    params["b2"] = jax.random.uniform(k4, (1, output_size), jnp.float32, -s2, s2)
    return params


if __name__ == "__main__":
    # Small shapes consistent with the module's forward.
    batch, seq_len = 2, 8
    input_size, hidden_size, num_layers, output_size = 16, 32, 2, 2

    key = jax.random.PRNGKey(0)
    key, kx = jax.random.split(key)
    x = jax.random.normal(kx, (batch, seq_len, input_size), jnp.float32)

    params = init_params(key, output_size, input_size, hidden_size, num_layers)

    out = lstm_regression_forward(x, params)
    jax.block_until_ready(out)
    assert out.shape == (batch, output_size)
    print("KERNEL_OK")
</pallas_src>

<mosaic_0001>
module attributes {stable_mosaic.version = 11 : i64} {
  func.func @kernel(%arg0: memref<64x16xf32, #tpu.memory_space<vmem>>, %arg1: memref<16x128xf32, #tpu.memory_space<vmem>>, %arg2: memref<32x128xf32, #tpu.memory_space<vmem>>, %arg3: memref<1x128xf32, #tpu.memory_space<vmem>>, %arg4: memref<32x128xf32, #tpu.memory_space<vmem>>, %arg5: memref<32x128xf32, #tpu.memory_space<vmem>>, %arg6: memref<1x128xf32, #tpu.memory_space<vmem>>, %arg7: memref<32x128xf32, #tpu.memory_space<vmem>>, %arg8: memref<1x128xf32, #tpu.memory_space<vmem>>, %arg9: memref<128x128xf32, #tpu.memory_space<vmem>>, %arg10: memref<1x128xf32, #tpu.memory_space<vmem>>, %arg11: memref<8x128xf32, #tpu.memory_space<vmem>>) attributes {dimension_semantics = [], scalar_prefetch = 0 : i64, scratch_operands = 0 : i64, tpu.core_type = #tpu.core_type<tc>} {
    %c0 = arith.constant 0 : index
    %c0_0 = arith.constant 0 : index
    %0 = vector.load %arg0[%c0, %c0_0] : memref<64x16xf32, #tpu.memory_space<vmem>>, vector<64x16xf32>
    %c0_1 = arith.constant 0 : index
    %c0_2 = arith.constant 0 : index
    %1 = vector.load %arg1[%c0_1, %c0_2] : memref<16x128xf32, #tpu.memory_space<vmem>>, vector<16x128xf32>
    %cst = arith.constant dense<0.000000e+00> : vector<64x128xf32>
    %2 = tpu.matmul %0, %1, %cst {dimension_numbers = #tpu.dot_dimension_numbers<[1], [0], [0], [1], [0, 0, 1, 1], [], []>} : vector<64x16xf32>, vector<16x128xf32>, vector<64x128xf32> -> vector<64x128xf32>
    %c0_3 = arith.constant 0 : index
    %c0_4 = arith.constant 0 : index
    %3 = vector.load %arg3[%c0_3, %c0_4] : memref<1x128xf32, #tpu.memory_space<vmem>>, vector<1x128xf32>
    %4 = vector.broadcast %3 : vector<1x128xf32> to vector<64x128xf32>
    %5 = arith.addf %2, %4 : vector<64x128xf32>
    %c0_5 = arith.constant 0 : index
    %c0_6 = arith.constant 0 : index
    %6 = vector.load %arg2[%c0_5, %c0_6] : memref<32x128xf32, #tpu.memory_space<vmem>>, vector<32x128xf32>
    %cst_7 = arith.constant 0.000000e+00 : f32
    %7 = vector.broadcast %cst_7 : f32 to vector<8x32xf32>
    %cst_8 = arith.constant 0.000000e+00 : f32
    %8 = vector.broadcast %cst_8 : f32 to vector<8x32xf32>
    %9 = vector.extract_strided_slice %5 {offsets = [0, 0], sizes = [8, 128], strides = [1, 1]} : vector<64x128xf32> to vector<8x128xf32>
    %cst_9 = arith.constant dense<0.000000e+00> : vector<8x128xf32>
    %10 = tpu.matmul %7, %6, %cst_9 {dimension_numbers = #tpu.dot_dimension_numbers<[1], [0], [0], [1], [0, 0, 1, 1], [], []>} : vector<8x32xf32>, vector<32x128xf32>, vector<8x128xf32> -> vector<8x128xf32>
    %11 = arith.addf %9, %10 : vector<8x128xf32>
    %12 = vector.extract_strided_slice %11 {offsets = [0, 0], sizes = [8, 32], strides = [1, 1]} : vector<8x128xf32> to vector<8x32xf32>
    %13 = arith.negf %12 : vector<8x32xf32>
    %14 = math.exp %13 : vector<8x32xf32>
    %cst_10 = arith.constant 1.000000e+00 : f32
    %15 = vector.broadcast %cst_10 : f32 to vector<8x32xf32>
    %16 = arith.addf %15, %14 : vector<8x32xf32>
    %17 = arith.divf %15, %16 : vector<8x32xf32>
    %18 = vector.extract_strided_slice %11 {offsets = [0, 32], sizes = [8, 32], strides = [1, 1]} : vector<8x128xf32> to vector<8x32xf32>
    %19 = arith.negf %18 : vector<8x32xf32>
    %20 = math.exp %19 : vector<8x32xf32>
    %cst_11 = arith.constant 1.000000e+00 : f32
    %21 = vector.broadcast %cst_11 : f32 to vector<8x32xf32>
    %22 = arith.addf %21, %20 : vector<8x32xf32>
    %23 = arith.divf %21, %22 : vector<8x32xf32>
    %24 = vector.extract_strided_slice %11 {offsets = [0, 64], sizes = [8, 32], strides = [1, 1]} : vector<8x128xf32> to vector<8x32xf32>
    %25 = math.tanh %24 : vector<8x32xf32>
    %26 = vector.extract_strided_slice %11 {offsets = [0, 96], sizes = [8, 32], strides = [1, 1]} : vector<8x128xf32> to vector<8x32xf32>
    %27 = arith.negf %26 : vector<8x32xf32>
    %28 = math.exp %27 : vector<8x32xf32>
    %cst_12 = arith.constant 1.000000e+00 : f32
    %29 = vector.broadcast %cst_12 : f32 to vector<8x32xf32>
    %30 = arith.addf %29, %28 : vector<8x32xf32>
    %31 = arith.divf %29, %30 : vector<8x32xf32>
    %32 = arith.mulf %23, %8 : vector<8x32xf32>
    %33 = arith.mulf %17, %25 : vector<8x32xf32>
    %34 = arith.addf %32, %33 : vector<8x32xf32>
    %35 = math.tanh %34 : vector<8x32xf32>
    %36 = arith.mulf %31, %35 : vector<8x32xf32>
    %37 = vector.extract_strided_slice %5 {offsets = [8, 0], sizes = [8, 128], strides = [1, 1]} : vector<64x128xf32> to vector<8x128xf32>
    %cst_13 = arith.constant dense<0.000000e+00> : vector<8x128xf32>
    %38 = tpu.matmul %36, %6, %cst_13 {dimension_numbers = #tpu.dot_dimension_numbers<[1], [0], [0], [1], [0, 0, 1, 1], [], []>} : vector<8x32xf32>, vector<32x128xf32>, vector<8x128xf32> -> vector<8x128xf32>
    %39 = arith.addf %37, %38 : vector<8x128xf32>
    %40 = vector.extract_strided_slice %39 {offsets = [0, 0], sizes = [8, 32], strides = [1, 1]} : vector<8x128xf32> to vector<8x32xf32>
    %41 = arith.negf %40 : vector<8x32xf32>
    %42 = math.exp %41 : vector<8x32xf32>
    %cst_14 = arith.constant 1.000000e+00 : f32
    %43 = vector.broadcast %cst_14 : f32 to vector<8x32xf32>
    %44 = arith.addf %43, %42 : vector<8x32xf32>
    %45 = arith.divf %43, %44 : vector<8x32xf32>
    %46 = vector.extract_strided_slice %39 {offsets = [0, 32], sizes = [8, 32], strides = [1, 1]} : vector<8x128xf32> to vector<8x32xf32>
    %47 = arith.negf %46 : vector<8x32xf32>
    %48 = math.exp %47 : vector<8x32xf32>
    %cst_15 = arith.constant 1.000000e+00 : f32
    %49 = vector.broadcast %cst_15 : f32 to vector<8x32xf32>
    %50 = arith.addf %49, %48 : vector<8x32xf32>
    %51 = arith.divf %49, %50 : vector<8x32xf32>
    %52 = vector.extract_strided_slice %39 {offsets = [0, 64], sizes = [8, 32], strides = [1, 1]} : vector<8x128xf32> to vector<8x32xf32>
    %53 = math.tanh %52 : vector<8x32xf32>
    %54 = vector.extract_strided_slice %39 {offsets = [0, 96], sizes = [8, 32], strides = [1, 1]} : vector<8x128xf32> to vector<8x32xf32>
    %55 = arith.negf %54 : vector<8x32xf32>
    %56 = math.exp %55 : vector<8x32xf32>
    %cst_16 = arith.constant 1.000000e+00 : f32
    %57 = vector.broadcast %cst_16 : f32 to vector<8x32xf32>
    %58 = arith.addf %57, %56 : vector<8x32xf32>
    %59 = arith.divf %57, %58 : vector<8x32xf32>
    %60 = arith.mulf %51, %34 : vector<8x32xf32>
    %61 = arith.mulf %45, %53 : vector<8x32xf32>
    %62 = arith.addf %60, %61 : vector<8x32xf32>
    %63 = math.tanh %62 : vector<8x32xf32>
    %64 = arith.mulf %59, %63 : vector<8x32xf32>
    %65 = vector.extract_strided_slice %5 {offsets = [16, 0], sizes = [8, 128], strides = [1, 1]} : vector<64x128xf32> to vector<8x128xf32>
    %cst_17 = arith.constant dense<0.000000e+00> : vector<8x128xf32>
    %66 = tpu.matmul %64, %6, %cst_17 {dimension_numbers = #tpu.dot_dimension_numbers<[1], [0], [0], [1], [0, 0, 1, 1], [], []>} : vector<8x32xf32>, vector<32x128xf32>, vector<8x128xf32> -> vector<8x128xf32>
    %67 = arith.addf %65, %66 : vector<8x128xf32>
    %68 = vector.extract_strided_slice %67 {offsets = [0, 0], sizes = [8, 32], strides = [1, 1]} : vector<8x128xf32> to vector<8x32xf32>
    %69 = arith.negf %68 : vector<8x32xf32>
    %70 = math.exp %69 : vector<8x32xf32>
    %cst_18 = arith.constant 1.000000e+00 : f32
    %71 = vector.broadcast %cst_18 : f32 to vector<8x32xf32>
    %72 = arith.addf %71, %70 : vector<8x32xf32>
    %73 = arith.divf %71, %72 : vector<8x32xf32>
    %74 = vector.extract_strided_slice %67 {offsets = [0, 32], sizes = [8, 32], strides = [1, 1]} : vector<8x128xf32> to vector<8x32xf32>
    %75 = arith.negf %74 : vector<8x32xf32>
    %76 = math.exp %75 : vector<8x32xf32>
    %cst_19 = arith.constant 1.000000e+00 : f32
    %77 = vector.broadcast %cst_19 : f32 to vector<8x32xf32>
    %78 = arith.addf %77, %76 : vector<8x32xf32>
    %79 = arith.divf %77, %78 : vector<8x32xf32>
    %80 = vector.extract_strided_slice %67 {offsets = [0, 64], sizes = [8, 32], strides = [1, 1]} : vector<8x128xf32> to vector<8x32xf32>
    %81 = math.tanh %80 : vector<8x32xf32>
    %82 = vector.extract_strided_slice %67 {offsets = [0, 96], sizes = [8, 32], strides = [1, 1]} : vector<8x128xf32> to vector<8x32xf32>
    %83 = arith.negf %82 : vector<8x32xf32>
    %84 = math.exp %83 : vector<8x32xf32>
    %cst_20 = arith.constant 1.000000e+00 : f32
    %85 = vector.broadcast %cst_20 : f32 to vector<8x32xf32>
    %86 = arith.addf %85, %84 : vector<8x32xf32>
    %87 = arith.divf %85, %86 : vector<8x32xf32>
    %88 = arith.mulf %79, %62 : vector<8x32xf32>
    %89 = arith.mulf %73, %81 : vector<8x32xf32>
    %90 = arith.addf %88, %89 : vector<8x32xf32>
    %91 = math.tanh %90 : vector<8x32xf32>
    %92 = arith.mulf %87, %91 : vector<8x32xf32>
    %93 = vector.extract_strided_slice %5 {offsets = [24, 0], sizes = [8, 128], strides = [1, 1]} : vector<64x128xf32> to vector<8x128xf32>
    %cst_21 = arith.constant dense<0.000000e+00> : vector<8x128xf32>
    %94 = tpu.matmul %92, %6, %cst_21 {dimension_numbers = #tpu.dot_dimension_numbers<[1], [0], [0], [1], [0, 0, 1, 1], [], []>} : vector<8x32xf32>, vector<32x128xf32>, vector<8x128xf32> -> vector<8x128xf32>
    %95 = arith.addf %93, %94 : vector<8x128xf32>
    %96 = vector.extract_strided_slice %95 {offsets = [0, 0], sizes = [8, 32], strides = [1, 1]} : vector<8x128xf32> to vector<8x32xf32>
    %97 = arith.negf %96 : vector<8x32xf32>
    %98 = math.exp %97 : vector<8x32xf32>
    %cst_22 = arith.constant 1.000000e+00 : f32
    %99 = vector.broadcast %cst_22 : f32 to vector<8x32xf32>
    %100 = arith.addf %99, %98 : vector<8x32xf32>
    %101 = arith.divf %99, %100 : vector<8x32xf32>
    %102 = vector.extract_strided_slice %95 {offsets = [0, 32], sizes = [8, 32], strides = [1, 1]} : vector<8x128xf32> to vector<8x32xf32>
    %103 = arith.negf %102 : vector<8x32xf32>
    %104 = math.exp %103 : vector<8x32xf32>
    %cst_23 = arith.constant 1.000000e+00 : f32
    %105 = vector.broadcast %cst_23 : f32 to vector<8x32xf32>
    %106 = arith.addf %105, %104 : vector<8x32xf32>
    %107 = arith.divf %105, %106 : vector<8x32xf32>
    %108 = vector.extract_strided_slice %95 {offsets = [0, 64], sizes = [8, 32], strides = [1, 1]} : vector<8x128xf32> to vector<8x32xf32>
    %109 = math.tanh %108 : vector<8x32xf32>
    %110 = vector.extract_strided_slice %95 {offsets = [0, 96], sizes = [8, 32], strides = [1, 1]} : vector<8x128xf32> to vector<8x32xf32>
    %111 = arith.negf %110 : vector<8x32xf32>
    %112 = math.exp %111 : vector<8x32xf32>
    %cst_24 = arith.constant 1.000000e+00 : f32
    %113 = vector.broadcast %cst_24 : f32 to vector<8x32xf32>
    %114 = arith.addf %113, %112 : vector<8x32xf32>
    %115 = arith.divf %113, %114 : vector<8x32xf32>
    %116 = arith.mulf %107, %90 : vector<8x32xf32>
    %117 = arith.mulf %101, %109 : vector<8x32xf32>
    %118 = arith.addf %116, %117 : vector<8x32xf32>
    %119 = math.tanh %118 : vector<8x32xf32>
    %120 = arith.mulf %115, %119 : vector<8x32xf32>
    %121 = vector.extract_strided_slice %5 {offsets = [32, 0], sizes = [8, 128], strides = [1, 1]} : vector<64x128xf32> to vector<8x128xf32>
    %cst_25 = arith.constant dense<0.000000e+00> : vector<8x128xf32>
    %122 = tpu.matmul %120, %6, %cst_25 {dimension_numbers = #tpu.dot_dimension_numbers<[1], [0], [0], [1], [0, 0, 1, 1], [], []>} : vector<8x32xf32>, vector<32x128xf32>, vector<8x128xf32> -> vector<8x128xf32>
    %123 = arith.addf %121, %122 : vector<8x128xf32>
    %124 = vector.extract_strided_slice %123 {offsets = [0, 0], sizes = [8, 32], strides = [1, 1]} : vector<8x128xf32> to vector<8x32xf32>
    %125 = arith.negf %124 : vector<8x32xf32>
    %126 = math.exp %125 : vector<8x32xf32>
    %cst_26 = arith.constant 1.000000e+00 : f32
    %127 = vector.broadcast %cst_26 : f32 to vector<8x32xf32>
    %128 = arith.addf %127, %126 : vector<8x32xf32>
    %129 = arith.divf %127, %128 : vector<8x32xf32>
    %130 = vector.extract_strided_slice %123 {offsets = [0, 32], sizes = [8, 32], strides = [1, 1]} : vector<8x128xf32> to vector<8x32xf32>
    %131 = arith.negf %130 : vector<8x32xf32>
    %132 = math.exp %131 : vector<8x32xf32>
    %cst_27 = arith.constant 1.000000e+00 : f32
    %133 = vector.broadcast %cst_27 : f32 to vector<8x32xf32>
    %134 = arith.addf %133, %132 : vector<8x32xf32>
    %135 = arith.divf %133, %134 : vector<8x32xf32>
    %136 = vector.extract_strided_slice %123 {offsets = [0, 64], sizes = [8, 32], strides = [1, 1]} : vector<8x128xf32> to vector<8x32xf32>
    %137 = math.tanh %136 : vector<8x32xf32>
    %138 = vector.extract_strided_slice %123 {offsets = [0, 96], sizes = [8, 32], strides = [1, 1]} : vector<8x128xf32> to vector<8x32xf32>
    %139 = arith.negf %138 : vector<8x32xf32>
    %140 = math.exp %139 : vector<8x32xf32>
    %cst_28 = arith.constant 1.000000e+00 : f32
    %141 = vector.broadcast %cst_28 : f32 to vector<8x32xf32>
    %142 = arith.addf %141, %140 : vector<8x32xf32>
    %143 = arith.divf %141, %142 : vector<8x32xf32>
    %144 = arith.mulf %135, %118 : vector<8x32xf32>
    %145 = arith.mulf %129, %137 : vector<8x32xf32>
    %146 = arith.addf %144, %145 : vector<8x32xf32>
    %147 = math.tanh %146 : vector<8x32xf32>
    %148 = arith.mulf %143, %147 : vector<8x32xf32>
    %149 = vector.extract_strided_slice %5 {offsets = [40, 0], sizes = [8, 128], strides = [1, 1]} : vector<64x128xf32> to vector<8x128xf32>
    %cst_29 = arith.constant dense<0.000000e+00> : vector<8x128xf32>
    %150 = tpu.matmul %148, %6, %cst_29 {dimension_numbers = #tpu.dot_dimension_numbers<[1], [0], [0], [1], [0, 0, 1, 1], [], []>} : vector<8x32xf32>, vector<32x128xf32>, vector<8x128xf32> -> vector<8x128xf32>
    %151 = arith.addf %149, %150 : vector<8x128xf32>
    %152 = vector.extract_strided_slice %151 {offsets = [0, 0], sizes = [8, 32], strides = [1, 1]} : vector<8x128xf32> to vector<8x32xf32>
    %153 = arith.negf %152 : vector<8x32xf32>
    %154 = math.exp %153 : vector<8x32xf32>
    %cst_30 = arith.constant 1.000000e+00 : f32
    %155 = vector.broadcast %cst_30 : f32 to vector<8x32xf32>
    %156 = arith.addf %155, %154 : vector<8x32xf32>
    %157 = arith.divf %155, %156 : vector<8x32xf32>
    %158 = vector.extract_strided_slice %151 {offsets = [0, 32], sizes = [8, 32], strides = [1, 1]} : vector<8x128xf32> to vector<8x32xf32>
    %159 = arith.negf %158 : vector<8x32xf32>
    %160 = math.exp %159 : vector<8x32xf32>
    %cst_31 = arith.constant 1.000000e+00 : f32
    %161 = vector.broadcast %cst_31 : f32 to vector<8x32xf32>
    %162 = arith.addf %161, %160 : vector<8x32xf32>
    %163 = arith.divf %161, %162 : vector<8x32xf32>
    %164 = vector.extract_strided_slice %151 {offsets = [0, 64], sizes = [8, 32], strides = [1, 1]} : vector<8x128xf32> to vector<8x32xf32>
    %165 = math.tanh %164 : vector<8x32xf32>
    %166 = vector.extract_strided_slice %151 {offsets = [0, 96], sizes = [8, 32], strides = [1, 1]} : vector<8x128xf32> to vector<8x32xf32>
    %167 = arith.negf %166 : vector<8x32xf32>
    %168 = math.exp %167 : vector<8x32xf32>
    %cst_32 = arith.constant 1.000000e+00 : f32
    %169 = vector.broadcast %cst_32 : f32 to vector<8x32xf32>
    %170 = arith.addf %169, %168 : vector<8x32xf32>
    %171 = arith.divf %169, %170 : vector<8x32xf32>
    %172 = arith.mulf %163, %146 : vector<8x32xf32>
    %173 = arith.mulf %157, %165 : vector<8x32xf32>
    %174 = arith.addf %172, %173 : vector<8x32xf32>
    %175 = math.tanh %174 : vector<8x32xf32>
    %176 = arith.mulf %171, %175 : vector<8x32xf32>
    %177 = vector.extract_strided_slice %5 {offsets = [48, 0], sizes = [8, 128], strides = [1, 1]} : vector<64x128xf32> to vector<8x128xf32>
    %cst_33 = arith.constant dense<0.000000e+00> : vector<8x128xf32>
    %178 = tpu.matmul %176, %6, %cst_33 {dimension_numbers = #tpu.dot_dimension_numbers<[1], [0], [0], [1], [0, 0, 1, 1], [], []>} : vector<8x32xf32>, vector<32x128xf32>, vector<8x128xf32> -> vector<8x128xf32>
    %179 = arith.addf %177, %178 : vector<8x128xf32>
    %180 = vector.extract_strided_slice %179 {offsets = [0, 0], sizes = [8, 32], strides = [1, 1]} : vector<8x128xf32> to vector<8x32xf32>
    %181 = arith.negf %180 : vector<8x32xf32>
    %182 = math.exp %181 : vector<8x32xf32>
    %cst_34 = arith.constant 1.000000e+00 : f32
    %183 = vector.broadcast %cst_34 : f32 to vector<8x32xf32>
    %184 = arith.addf %183, %182 : vector<8x32xf32>
    %185 = arith.divf %183, %184 : vector<8x32xf32>
    %186 = vector.extract_strided_slice %179 {offsets = [0, 32], sizes = [8, 32], strides = [1, 1]} : vector<8x128xf32> to vector<8x32xf32>
    %187 = arith.negf %186 : vector<8x32xf32>
    %188 = math.exp %187 : vector<8x32xf32>
    %cst_35 = arith.constant 1.000000e+00 : f32
    %189 = vector.broadcast %cst_35 : f32 to vector<8x32xf32>
    %190 = arith.addf %189, %188 : vector<8x32xf32>
    %191 = arith.divf %189, %190 : vector<8x32xf32>
    %192 = vector.extract_strided_slice %179 {offsets = [0, 64], sizes = [8, 32], strides = [1, 1]} : vector<8x128xf32> to vector<8x32xf32>
    %193 = math.tanh %192 : vector<8x32xf32>
    %194 = vector.extract_strided_slice %179 {offsets = [0, 96], sizes = [8, 32], strides = [1, 1]} : vector<8x128xf32> to vector<8x32xf32>
    %195 = arith.negf %194 : vector<8x32xf32>
    %196 = math.exp %195 : vector<8x32xf32>
    %cst_36 = arith.constant 1.000000e+00 : f32
    %197 = vector.broadcast %cst_36 : f32 to vector<8x32xf32>
    %198 = arith.addf %197, %196 : vector<8x32xf32>
    %199 = arith.divf %197, %198 : vector<8x32xf32>
    %200 = arith.mulf %191, %174 : vector<8x32xf32>
    %201 = arith.mulf %185, %193 : vector<8x32xf32>
    %202 = arith.addf %200, %201 : vector<8x32xf32>
    %203 = math.tanh %202 : vector<8x32xf32>
    %204 = arith.mulf %199, %203 : vector<8x32xf32>
    %205 = vector.extract_strided_slice %5 {offsets = [56, 0], sizes = [8, 128], strides = [1, 1]} : vector<64x128xf32> to vector<8x128xf32>
    %cst_37 = arith.constant dense<0.000000e+00> : vector<8x128xf32>
    %206 = tpu.matmul %204, %6, %cst_37 {dimension_numbers = #tpu.dot_dimension_numbers<[1], [0], [0], [1], [0, 0, 1, 1], [], []>} : vector<8x32xf32>, vector<32x128xf32>, vector<8x128xf32> -> vector<8x128xf32>
    %207 = arith.addf %205, %206 : vector<8x128xf32>
    %208 = vector.extract_strided_slice %207 {offsets = [0, 0], sizes = [8, 32], strides = [1, 1]} : vector<8x128xf32> to vector<8x32xf32>
    %209 = arith.negf %208 : vector<8x32xf32>
    %210 = math.exp %209 : vector<8x32xf32>
    %cst_38 = arith.constant 1.000000e+00 : f32
    %211 = vector.broadcast %cst_38 : f32 to vector<8x32xf32>
    %212 = arith.addf %211, %210 : vector<8x32xf32>
    %213 = arith.divf %211, %212 : vector<8x32xf32>
    %214 = vector.extract_strided_slice %207 {offsets = [0, 32], sizes = [8, 32], strides = [1, 1]} : vector<8x128xf32> to vector<8x32xf32>
    %215 = arith.negf %214 : vector<8x32xf32>
    %216 = math.exp %215 : vector<8x32xf32>
    %cst_39 = arith.constant 1.000000e+00 : f32
    %217 = vector.broadcast %cst_39 : f32 to vector<8x32xf32>
    %218 = arith.addf %217, %216 : vector<8x32xf32>
    %219 = arith.divf %217, %218 : vector<8x32xf32>
    %220 = vector.extract_strided_slice %207 {offsets = [0, 64], sizes = [8, 32], strides = [1, 1]} : vector<8x128xf32> to vector<8x32xf32>
    %221 = math.tanh %220 : vector<8x32xf32>
    %222 = vector.extract_strided_slice %207 {offsets = [0, 96], sizes = [8, 32], strides = [1, 1]} : vector<8x128xf32> to vector<8x32xf32>
    %223 = arith.negf %222 : vector<8x32xf32>
    %224 = math.exp %223 : vector<8x32xf32>
    %cst_40 = arith.constant 1.000000e+00 : f32
    %225 = vector.broadcast %cst_40 : f32 to vector<8x32xf32>
    %226 = arith.addf %225, %224 : vector<8x32xf32>
    %227 = arith.divf %225, %226 : vector<8x32xf32>
    %228 = arith.mulf %219, %202 : vector<8x32xf32>
    %229 = arith.mulf %213, %221 : vector<8x32xf32>
    %230 = arith.addf %228, %229 : vector<8x32xf32>
    %231 = math.tanh %230 : vector<8x32xf32>
    %232 = arith.mulf %227, %231 : vector<8x32xf32>
    %233 = tpu.concatenate %36, %64, %92, %120, %148, %176, %204, %232 in 0 : vector<8x32xf32>, vector<8x32xf32>, vector<8x32xf32>, vector<8x32xf32>, vector<8x32xf32>, vector<8x32xf32>, vector<8x32xf32>, vector<8x32xf32> -> vector<64x32xf32>
    %c0_41 = arith.constant 0 : index
    %c0_42 = arith.constant 0 : index
    %234 = vector.load %arg4[%c0_41, %c0_42] : memref<32x128xf32, #tpu.memory_space<vmem>>, vector<32x128xf32>
    %cst_43 = arith.constant dense<0.000000e+00> : vector<64x128xf32>
    %235 = tpu.matmul %233, %234, %cst_43 {dimension_numbers = #tpu.dot_dimension_numbers<[1], [0], [0], [1], [0, 0, 1, 1], [], []>} : vector<64x32xf32>, vector<32x128xf32>, vector<64x128xf32> -> vector<64x128xf32>
    %c0_44 = arith.constant 0 : index
    %c0_45 = arith.constant 0 : index
    %236 = vector.load %arg6[%c0_44, %c0_45] : memref<1x128xf32, #tpu.memory_space<vmem>>, vector<1x128xf32>
    %237 = vector.broadcast %236 : vector<1x128xf32> to vector<64x128xf32>
    %238 = arith.addf %235, %237 : vector<64x128xf32>
    %c0_46 = arith.constant 0 : index
    %c0_47 = arith.constant 0 : index
    %239 = vector.load %arg5[%c0_46, %c0_47] : memref<32x128xf32, #tpu.memory_space<vmem>>, vector<32x128xf32>
    %cst_48 = arith.constant 0.000000e+00 : f32
    %240 = vector.broadcast %cst_48 : f32 to vector<8x32xf32>
    %cst_49 = arith.constant 0.000000e+00 : f32
    %241 = vector.broadcast %cst_49 : f32 to vector<8x32xf32>
    %242 = vector.extract_strided_slice %238 {offsets = [0, 0], sizes = [8, 128], strides = [1, 1]} : vector<64x128xf32> to vector<8x128xf32>
    %cst_50 = arith.constant dense<0.000000e+00> : vector<8x128xf32>
    %243 = tpu.matmul %240, %239, %cst_50 {dimension_numbers = #tpu.dot_dimension_numbers<[1], [0], [0], [1], [0, 0, 1, 1], [], []>} : vector<8x32xf32>, vector<32x128xf32>, vector<8x128xf32> -> vector<8x128xf32>
    %244 = arith.addf %242, %243 : vector<8x128xf32>
    %245 = vector.extract_strided_slice %244 {offsets = [0, 0], sizes = [8, 32], strides = [1, 1]} : vector<8x128xf32> to vector<8x32xf32>
    %246 = arith.negf %245 : vector<8x32xf32>
    %247 = math.exp %246 : vector<8x32xf32>
    %cst_51 = arith.constant 1.000000e+00 : f32
    %248 = vector.broadcast %cst_51 : f32 to vector<8x32xf32>
    %249 = arith.addf %248, %247 : vector<8x32xf32>
    %250 = arith.divf %248, %249 : vector<8x32xf32>
    %251 = vector.extract_strided_slice %244 {offsets = [0, 32], sizes = [8, 32], strides = [1, 1]} : vector<8x128xf32> to vector<8x32xf32>
    %252 = arith.negf %251 : vector<8x32xf32>
    %253 = math.exp %252 : vector<8x32xf32>
    %cst_52 = arith.constant 1.000000e+00 : f32
    %254 = vector.broadcast %cst_52 : f32 to vector<8x32xf32>
    %255 = arith.addf %254, %253 : vector<8x32xf32>
    %256 = arith.divf %254, %255 : vector<8x32xf32>
    %257 = vector.extract_strided_slice %244 {offsets = [0, 64], sizes = [8, 32], strides = [1, 1]} : vector<8x128xf32> to vector<8x32xf32>
    %258 = math.tanh %257 : vector<8x32xf32>
    %259 = vector.extract_strided_slice %244 {offsets = [0, 96], sizes = [8, 32], strides = [1, 1]} : vector<8x128xf32> to vector<8x32xf32>
    %260 = arith.negf %259 : vector<8x32xf32>
    %261 = math.exp %260 : vector<8x32xf32>
    %cst_53 = arith.constant 1.000000e+00 : f32
    %262 = vector.broadcast %cst_53 : f32 to vector<8x32xf32>
    %263 = arith.addf %262, %261 : vector<8x32xf32>
    %264 = arith.divf %262, %263 : vector<8x32xf32>
    %265 = arith.mulf %256, %241 : vector<8x32xf32>
    %266 = arith.mulf %250, %258 : vector<8x32xf32>
    %267 = arith.addf %265, %266 : vector<8x32xf32>
    %268 = math.tanh %267 : vector<8x32xf32>
    %269 = arith.mulf %264, %268 : vector<8x32xf32>
    %270 = vector.extract_strided_slice %238 {offsets = [8, 0], sizes = [8, 128], strides = [1, 1]} : vector<64x128xf32> to vector<8x128xf32>
    %cst_54 = arith.constant dense<0.000000e+00> : vector<8x128xf32>
    %271 = tpu.matmul %269, %239, %cst_54 {dimension_numbers = #tpu.dot_dimension_numbers<[1], [0], [0], [1], [0, 0, 1, 1], [], []>} : vector<8x32xf32>, vector<32x128xf32>, vector<8x128xf32> -> vector<8x128xf32>
    %272 = arith.addf %270, %271 : vector<8x128xf32>
    %273 = vector.extract_strided_slice %272 {offsets = [0, 0], sizes = [8, 32], strides = [1, 1]} : vector<8x128xf32> to vector<8x32xf32>
    %274 = arith.negf %273 : vector<8x32xf32>
    %275 = math.exp %274 : vector<8x32xf32>
    %cst_55 = arith.constant 1.000000e+00 : f32
    %276 = vector.broadcast %cst_55 : f32 to vector<8x32xf32>
    %277 = arith.addf %276, %275 : vector<8x32xf32>
    %278 = arith.divf %276, %277 : vector<8x32xf32>
    %279 = vector.extract_strided_slice %272 {offsets = [0, 32], sizes = [8, 32], strides = [1, 1]} : vector<8x128xf32> to vector<8x32xf32>
    %280 = arith.negf %279 : vector<8x32xf32>
    %281 = math.exp %280 : vector<8x32xf32>
    %cst_56 = arith.constant 1.000000e+00 : f32
    %282 = vector.broadcast %cst_56 : f32 to vector<8x32xf32>
    %283 = arith.addf %282, %281 : vector<8x32xf32>
    %284 = arith.divf %282, %283 : vector<8x32xf32>
    %285 = vector.extract_strided_slice %272 {offsets = [0, 64], sizes = [8, 32], strides = [1, 1]} : vector<8x128xf32> to vector<8x32xf32>
    %286 = math.tanh %285 : vector<8x32xf32>
    %287 = vector.extract_strided_slice %272 {offsets = [0, 96], sizes = [8, 32], strides = [1, 1]} : vector<8x128xf32> to vector<8x32xf32>
    %288 = arith.negf %287 : vector<8x32xf32>
    %289 = math.exp %288 : vector<8x32xf32>
    %cst_57 = arith.constant 1.000000e+00 : f32
    %290 = vector.broadcast %cst_57 : f32 to vector<8x32xf32>
    %291 = arith.addf %290, %289 : vector<8x32xf32>
    %292 = arith.divf %290, %291 : vector<8x32xf32>
    %293 = arith.mulf %284, %267 : vector<8x32xf32>
    %294 = arith.mulf %278, %286 : vector<8x32xf32>
    %295 = arith.addf %293, %294 : vector<8x32xf32>
    %296 = math.tanh %295 : vector<8x32xf32>
    %297 = arith.mulf %292, %296 : vector<8x32xf32>
    %298 = vector.extract_strided_slice %238 {offsets = [16, 0], sizes = [8, 128], strides = [1, 1]} : vector<64x128xf32> to vector<8x128xf32>
    %cst_58 = arith.constant dense<0.000000e+00> : vector<8x128xf32>
    %299 = tpu.matmul %297, %239, %cst_58 {dimension_numbers = #tpu.dot_dimension_numbers<[1], [0], [0], [1], [0, 0, 1, 1], [], []>} : vector<8x32xf32>, vector<32x128xf32>, vector<8x128xf32> -> vector<8x128xf32>
    %300 = arith.addf %298, %299 : vector<8x128xf32>
    %301 = vector.extract_strided_slice %300 {offsets = [0, 0], sizes = [8, 32], strides = [1, 1]} : vector<8x128xf32> to vector<8x32xf32>
    %302 = arith.negf %301 : vector<8x32xf32>
    %303 = math.exp %302 : vector<8x32xf32>
    %cst_59 = arith.constant 1.000000e+00 : f32
    %304 = vector.broadcast %cst_59 : f32 to vector<8x32xf32>
    %305 = arith.addf %304, %303 : vector<8x32xf32>
    %306 = arith.divf %304, %305 : vector<8x32xf32>
    %307 = vector.extract_strided_slice %300 {offsets = [0, 32], sizes = [8, 32], strides = [1, 1]} : vector<8x128xf32> to vector<8x32xf32>
    %308 = arith.negf %307 : vector<8x32xf32>
    %309 = math.exp %308 : vector<8x32xf32>
    %cst_60 = arith.constant 1.000000e+00 : f32
    %310 = vector.broadcast %cst_60 : f32 to vector<8x32xf32>
    %311 = arith.addf %310, %309 : vector<8x32xf32>
    %312 = arith.divf %310, %311 : vector<8x32xf32>
    %313 = vector.extract_strided_slice %300 {offsets = [0, 64], sizes = [8, 32], strides = [1, 1]} : vector<8x128xf32> to vector<8x32xf32>
    %314 = math.tanh %313 : vector<8x32xf32>
    %315 = vector.extract_strided_slice %300 {offsets = [0, 96], sizes = [8, 32], strides = [1, 1]} : vector<8x128xf32> to vector<8x32xf32>
    %316 = arith.negf %315 : vector<8x32xf32>
    %317 = math.exp %316 : vector<8x32xf32>
    %cst_61 = arith.constant 1.000000e+00 : f32
    %318 = vector.broadcast %cst_61 : f32 to vector<8x32xf32>
    %319 = arith.addf %318, %317 : vector<8x32xf32>
    %320 = arith.divf %318, %319 : vector<8x32xf32>
    %321 = arith.mulf %312, %295 : vector<8x32xf32>
    %322 = arith.mulf %306, %314 : vector<8x32xf32>
    %323 = arith.addf %321, %322 : vector<8x32xf32>
    %324 = math.tanh %323 : vector<8x32xf32>
    %325 = arith.mulf %320, %324 : vector<8x32xf32>
    %326 = vector.extract_strided_slice %238 {offsets = [24, 0], sizes = [8, 128], strides = [1, 1]} : vector<64x128xf32> to vector<8x128xf32>
    %cst_62 = arith.constant dense<0.000000e+00> : vector<8x128xf32>
    %327 = tpu.matmul %325, %239, %cst_62 {dimension_numbers = #tpu.dot_dimension_numbers<[1], [0], [0], [1], [0, 0, 1, 1], [], []>} : vector<8x32xf32>, vector<32x128xf32>, vector<8x128xf32> -> vector<8x128xf32>
    %328 = arith.addf %326, %327 : vector<8x128xf32>
    %329 = vector.extract_strided_slice %328 {offsets = [0, 0], sizes = [8, 32], strides = [1, 1]} : vector<8x128xf32> to vector<8x32xf32>
    %330 = arith.negf %329 : vector<8x32xf32>
    %331 = math.exp %330 : vector<8x32xf32>
    %cst_63 = arith.constant 1.000000e+00 : f32
    %332 = vector.broadcast %cst_63 : f32 to vector<8x32xf32>
    %333 = arith.addf %332, %331 : vector<8x32xf32>
    %334 = arith.divf %332, %333 : vector<8x32xf32>
    %335 = vector.extract_strided_slice %328 {offsets = [0, 32], sizes = [8, 32], strides = [1, 1]} : vector<8x128xf32> to vector<8x32xf32>
    %336 = arith.negf %335 : vector<8x32xf32>
    %337 = math.exp %336 : vector<8x32xf32>
    %cst_64 = arith.constant 1.000000e+00 : f32
    %338 = vector.broadcast %cst_64 : f32 to vector<8x32xf32>
    %339 = arith.addf %338, %337 : vector<8x32xf32>
    %340 = arith.divf %338, %339 : vector<8x32xf32>
    %341 = vector.extract_strided_slice %328 {offsets = [0, 64], sizes = [8, 32], strides = [1, 1]} : vector<8x128xf32> to vector<8x32xf32>
    %342 = math.tanh %341 : vector<8x32xf32>
    %343 = vector.extract_strided_slice %328 {offsets = [0, 96], sizes = [8, 32], strides = [1, 1]} : vector<8x128xf32> to vector<8x32xf32>
    %344 = arith.negf %343 : vector<8x32xf32>
    %345 = math.exp %344 : vector<8x32xf32>
    %cst_65 = arith.constant 1.000000e+00 : f32
    %346 = vector.broadcast %cst_65 : f32 to vector<8x32xf32>
    %347 = arith.addf %346, %345 : vector<8x32xf32>
    %348 = arith.divf %346, %347 : vector<8x32xf32>
    %349 = arith.mulf %340, %323 : vector<8x32xf32>
    %350 = arith.mulf %334, %342 : vector<8x32xf32>
    %351 = arith.addf %349, %350 : vector<8x32xf32>
    %352 = math.tanh %351 : vector<8x32xf32>
    %353 = arith.mulf %348, %352 : vector<8x32xf32>
    %354 = vector.extract_strided_slice %238 {offsets = [32, 0], sizes = [8, 128], strides = [1, 1]} : vector<64x128xf32> to vector<8x128xf32>
    %cst_66 = arith.constant dense<0.000000e+00> : vector<8x128xf32>
    %355 = tpu.matmul %353, %239, %cst_66 {dimension_numbers = #tpu.dot_dimension_numbers<[1], [0], [0], [1], [0, 0, 1, 1], [], []>} : vector<8x32xf32>, vector<32x128xf32>, vector<8x128xf32> -> vector<8x128xf32>
    %356 = arith.addf %354, %355 : vector<8x128xf32>
    %357 = vector.extract_strided_slice %356 {offsets = [0, 0], sizes = [8, 32], strides = [1, 1]} : vector<8x128xf32> to vector<8x32xf32>
    %358 = arith.negf %357 : vector<8x32xf32>
    %359 = math.exp %358 : vector<8x32xf32>
    %cst_67 = arith.constant 1.000000e+00 : f32
    %360 = vector.broadcast %cst_67 : f32 to vector<8x32xf32>
    %361 = arith.addf %360, %359 : vector<8x32xf32>
    %362 = arith.divf %360, %361 : vector<8x32xf32>
    %363 = vector.extract_strided_slice %356 {offsets = [0, 32], sizes = [8, 32], strides = [1, 1]} : vector<8x128xf32> to vector<8x32xf32>
    %364 = arith.negf %363 : vector<8x32xf32>
    %365 = math.exp %364 : vector<8x32xf32>
    %cst_68 = arith.constant 1.000000e+00 : f32
    %366 = vector.broadcast %cst_68 : f32 to vector<8x32xf32>
    %367 = arith.addf %366, %365 : vector<8x32xf32>
    %368 = arith.divf %366, %367 : vector<8x32xf32>
    %369 = vector.extract_strided_slice %356 {offsets = [0, 64], sizes = [8, 32], strides = [1, 1]} : vector<8x128xf32> to vector<8x32xf32>
    %370 = math.tanh %369 : vector<8x32xf32>
    %371 = vector.extract_strided_slice %356 {offsets = [0, 96], sizes = [8, 32], strides = [1, 1]} : vector<8x128xf32> to vector<8x32xf32>
    %372 = arith.negf %371 : vector<8x32xf32>
    %373 = math.exp %372 : vector<8x32xf32>
    %cst_69 = arith.constant 1.000000e+00 : f32
    %374 = vector.broadcast %cst_69 : f32 to vector<8x32xf32>
    %375 = arith.addf %374, %373 : vector<8x32xf32>
    %376 = arith.divf %374, %375 : vector<8x32xf32>
    %377 = arith.mulf %368, %351 : vector<8x32xf32>
    %378 = arith.mulf %362, %370 : vector<8x32xf32>
    %379 = arith.addf %377, %378 : vector<8x32xf32>
    %380 = math.tanh %379 : vector<8x32xf32>
    %381 = arith.mulf %376, %380 : vector<8x32xf32>
    %382 = vector.extract_strided_slice %238 {offsets = [40, 0], sizes = [8, 128], strides = [1, 1]} : vector<64x128xf32> to vector<8x128xf32>
    %cst_70 = arith.constant dense<0.000000e+00> : vector<8x128xf32>
    %383 = tpu.matmul %381, %239, %cst_70 {dimension_numbers = #tpu.dot_dimension_numbers<[1], [0], [0], [1], [0, 0, 1, 1], [], []>} : vector<8x32xf32>, vector<32x128xf32>, vector<8x128xf32> -> vector<8x128xf32>
    %384 = arith.addf %382, %383 : vector<8x128xf32>
    %385 = vector.extract_strided_slice %384 {offsets = [0, 0], sizes = [8, 32], strides = [1, 1]} : vector<8x128xf32> to vector<8x32xf32>
    %386 = arith.negf %385 : vector<8x32xf32>
    %387 = math.exp %386 : vector<8x32xf32>
    %cst_71 = arith.constant 1.000000e+00 : f32
    %388 = vector.broadcast %cst_71 : f32 to vector<8x32xf32>
    %389 = arith.addf %388, %387 : vector<8x32xf32>
    %390 = arith.divf %388, %389 : vector<8x32xf32>
    %391 = vector.extract_strided_slice %384 {offsets = [0, 32], sizes = [8, 32], strides = [1, 1]} : vector<8x128xf32> to vector<8x32xf32>
    %392 = arith.negf %391 : vector<8x32xf32>
    %393 = math.exp %392 : vector<8x32xf32>
    %cst_72 = arith.constant 1.000000e+00 : f32
    %394 = vector.broadcast %cst_72 : f32 to vector<8x32xf32>
    %395 = arith.addf %394, %393 : vector<8x32xf32>
    %396 = arith.divf %394, %395 : vector<8x32xf32>
    %397 = vector.extract_strided_slice %384 {offsets = [0, 64], sizes = [8, 32], strides = [1, 1]} : vector<8x128xf32> to vector<8x32xf32>
    %398 = math.tanh %397 : vector<8x32xf32>
    %399 = vector.extract_strided_slice %384 {offsets = [0, 96], sizes = [8, 32], strides = [1, 1]} : vector<8x128xf32> to vector<8x32xf32>
    %400 = arith.negf %399 : vector<8x32xf32>
    %401 = math.exp %400 : vector<8x32xf32>
    %cst_73 = arith.constant 1.000000e+00 : f32
    %402 = vector.broadcast %cst_73 : f32 to vector<8x32xf32>
    %403 = arith.addf %402, %401 : vector<8x32xf32>
    %404 = arith.divf %402, %403 : vector<8x32xf32>
    %405 = arith.mulf %396, %379 : vector<8x32xf32>
    %406 = arith.mulf %390, %398 : vector<8x32xf32>
    %407 = arith.addf %405, %406 : vector<8x32xf32>
    %408 = math.tanh %407 : vector<8x32xf32>
    %409 = arith.mulf %404, %408 : vector<8x32xf32>
    %410 = vector.extract_strided_slice %238 {offsets = [48, 0], sizes = [8, 128], strides = [1, 1]} : vector<64x128xf32> to vector<8x128xf32>
    %cst_74 = arith.constant dense<0.000000e+00> : vector<8x128xf32>
    %411 = tpu.matmul %409, %239, %cst_74 {dimension_numbers = #tpu.dot_dimension_numbers<[1], [0], [0], [1], [0, 0, 1, 1], [], []>} : vector<8x32xf32>, vector<32x128xf32>, vector<8x128xf32> -> vector<8x128xf32>
    %412 = arith.addf %410, %411 : vector<8x128xf32>
    %413 = vector.extract_strided_slice %412 {offsets = [0, 0], sizes = [8, 32], strides = [1, 1]} : vector<8x128xf32> to vector<8x32xf32>
    %414 = arith.negf %413 : vector<8x32xf32>
    %415 = math.exp %414 : vector<8x32xf32>
    %cst_75 = arith.constant 1.000000e+00 : f32
    %416 = vector.broadcast %cst_75 : f32 to vector<8x32xf32>
    %417 = arith.addf %416, %415 : vector<8x32xf32>
    %418 = arith.divf %416, %417 : vector<8x32xf32>
    %419 = vector.extract_strided_slice %412 {offsets = [0, 32], sizes = [8, 32], strides = [1, 1]} : vector<8x128xf32> to vector<8x32xf32>
    %420 = arith.negf %419 : vector<8x32xf32>
    %421 = math.exp %420 : vector<8x32xf32>
    %cst_76 = arith.constant 1.000000e+00 : f32
    %422 = vector.broadcast %cst_76 : f32 to vector<8x32xf32>
    %423 = arith.addf %422, %421 : vector<8x32xf32>
    %424 = arith.divf %422, %423 : vector<8x32xf32>
    %425 = vector.extract_strided_slice %412 {offsets = [0, 64], sizes = [8, 32], strides = [1, 1]} : vector<8x128xf32> to vector<8x32xf32>
    %426 = math.tanh %425 : vector<8x32xf32>
    %427 = vector.extract_strided_slice %412 {offsets = [0, 96], sizes = [8, 32], strides = [1, 1]} : vector<8x128xf32> to vector<8x32xf32>
    %428 = arith.negf %427 : vector<8x32xf32>
    %429 = math.exp %428 : vector<8x32xf32>
    %cst_77 = arith.constant 1.000000e+00 : f32
    %430 = vector.broadcast %cst_77 : f32 to vector<8x32xf32>
    %431 = arith.addf %430, %429 : vector<8x32xf32>
    %432 = arith.divf %430, %431 : vector<8x32xf32>
    %433 = arith.mulf %424, %407 : vector<8x32xf32>
    %434 = arith.mulf %418, %426 : vector<8x32xf32>
    %435 = arith.addf %433, %434 : vector<8x32xf32>
    %436 = math.tanh %435 : vector<8x32xf32>
    %437 = arith.mulf %432, %436 : vector<8x32xf32>
    %438 = vector.extract_strided_slice %238 {offsets = [56, 0], sizes = [8, 128], strides = [1, 1]} : vector<64x128xf32> to vector<8x128xf32>
    %cst_78 = arith.constant dense<0.000000e+00> : vector<8x128xf32>
    %439 = tpu.matmul %437, %239, %cst_78 {dimension_numbers = #tpu.dot_dimension_numbers<[1], [0], [0], [1], [0, 0, 1, 1], [], []>} : vector<8x32xf32>, vector<32x128xf32>, vector<8x128xf32> -> vector<8x128xf32>
    %440 = arith.addf %438, %439 : vector<8x128xf32>
    %441 = vector.extract_strided_slice %440 {offsets = [0, 0], sizes = [8, 32], strides = [1, 1]} : vector<8x128xf32> to vector<8x32xf32>
    %442 = arith.negf %441 : vector<8x32xf32>
    %443 = math.exp %442 : vector<8x32xf32>
    %cst_79 = arith.constant 1.000000e+00 : f32
    %444 = vector.broadcast %cst_79 : f32 to vector<8x32xf32>
    %445 = arith.addf %444, %443 : vector<8x32xf32>
    %446 = arith.divf %444, %445 : vector<8x32xf32>
    %447 = vector.extract_strided_slice %440 {offsets = [0, 32], sizes = [8, 32], strides = [1, 1]} : vector<8x128xf32> to vector<8x32xf32>
    %448 = arith.negf %447 : vector<8x32xf32>
    %449 = math.exp %448 : vector<8x32xf32>
    %cst_80 = arith.constant 1.000000e+00 : f32
    %450 = vector.broadcast %cst_80 : f32 to vector<8x32xf32>
    %451 = arith.addf %450, %449 : vector<8x32xf32>
    %452 = arith.divf %450, %451 : vector<8x32xf32>
    %453 = vector.extract_strided_slice %440 {offsets = [0, 64], sizes = [8, 32], strides = [1, 1]} : vector<8x128xf32> to vector<8x32xf32>
    %454 = math.tanh %453 : vector<8x32xf32>
    %455 = vector.extract_strided_slice %440 {offsets = [0, 96], sizes = [8, 32], strides = [1, 1]} : vector<8x128xf32> to vector<8x32xf32>
    %456 = arith.negf %455 : vector<8x32xf32>
    %457 = math.exp %456 : vector<8x32xf32>
    %cst_81 = arith.constant 1.000000e+00 : f32
    %458 = vector.broadcast %cst_81 : f32 to vector<8x32xf32>
    %459 = arith.addf %458, %457 : vector<8x32xf32>
    %460 = arith.divf %458, %459 : vector<8x32xf32>
    %461 = arith.mulf %452, %435 : vector<8x32xf32>
    %462 = arith.mulf %446, %454 : vector<8x32xf32>
    %463 = arith.addf %461, %462 : vector<8x32xf32>
    %464 = math.tanh %463 : vector<8x32xf32>
    %465 = arith.mulf %460, %464 : vector<8x32xf32>
    %c0_82 = arith.constant 0 : index
    %c0_83 = arith.constant 0 : index
    %466 = vector.load %arg7[%c0_82, %c0_83] : memref<32x128xf32, #tpu.memory_space<vmem>>, vector<32x128xf32>
    %cst_84 = arith.constant dense<0.000000e+00> : vector<8x128xf32>
    %467 = tpu.matmul %465, %466, %cst_84 {dimension_numbers = #tpu.dot_dimension_numbers<[1], [0], [0], [1], [0, 0, 1, 1], [], []>} : vector<8x32xf32>, vector<32x128xf32>, vector<8x128xf32> -> vector<8x128xf32>
    %c0_85 = arith.constant 0 : index
    %c0_86 = arith.constant 0 : index
    %468 = vector.load %arg8[%c0_85, %c0_86] : memref<1x128xf32, #tpu.memory_space<vmem>>, vector<1x128xf32>
    %469 = vector.broadcast %468 : vector<1x128xf32> to vector<8x128xf32>
    %470 = arith.addf %467, %469 : vector<8x128xf32>
    %cst_87 = arith.constant 0.000000e+00 : f32
    %471 = vector.broadcast %cst_87 : f32 to vector<8x128xf32>
    %472 = arith.maximumf %470, %471 : vector<8x128xf32>
    %c0_88 = arith.constant 0 : index
    %c0_89 = arith.constant 0 : index
    %473 = vector.load %arg9[%c0_88, %c0_89] : memref<128x128xf32, #tpu.memory_space<vmem>>, vector<128x128xf32>
    %cst_90 = arith.constant dense<0.000000e+00> : vector<8x128xf32>
    %474 = tpu.matmul %472, %473, %cst_90 {dimension_numbers = #tpu.dot_dimension_numbers<[1], [0], [0], [1], [0, 0, 1, 1], [], []>} : vector<8x128xf32>, vector<128x128xf32>, vector<8x128xf32> -> vector<8x128xf32>
    %c0_91 = arith.constant 0 : index
    %c0_92 = arith.constant 0 : index
    %475 = vector.load %arg10[%c0_91, %c0_92] : memref<1x128xf32, #tpu.memory_space<vmem>>, vector<1x128xf32>
    %476 = vector.broadcast %475 : vector<1x128xf32> to vector<8x128xf32>
    %477 = arith.addf %474, %476 : vector<8x128xf32>
    %c0_93 = arith.constant 0 : index
    %c0_94 = arith.constant 0 : index
    %478 = vector.load %arg11[%c0_93, %c0_94] : memref<8x128xf32, #tpu.memory_space<vmem>>, vector<8x128xf32>
    tpu.vector_store %arg11[%c0_93, %c0_94], %477 {strides = array<i32>} : memref<8x128xf32, #tpu.memory_space<vmem>>, vector<8x128xf32>,
    return
  }
}

</mosaic_0001>

<bundles_post_ra>
// kernel: lstm_regression_forward.1
= control target key start
LH: loop header
LB: loop body
LE: loop exit
PB: predicated region body
PF: predicated region fallthrough
CT: control target
= control target key end

     0   :  { %vm55_vm0 = vcmask 130048   ;;  %v2797_v3 = vmov 0.0|0.0   ;;  %vm2798_vm1 = vmmov 0   ;;  %v2799_v4 = vmov 0.0   ;;  %s3287_s1 = inlined_call_operand.vmem [shape: f32[16,128], index: 1, kind: input, shape index: {}]   ;;  %s3288_s0 = inlined_call_operand.vmem [shape: f32[64,16], index: 0, kind: input, shape index: {}]   ;;  %s3289_s2 = inlined_call_operand.vmem [shape: f32[32,128], index: 2, kind: input, shape index: {}]   ;;  %s3290_s3 = inlined_call_operand.vmem [shape: f32[1,128], index: 3, kind: input, shape index: {}]   ;;  %s3291_s4 = inlined_call_operand.vmem [shape: f32[32,128], index: 4, kind: input, shape index: {}]   ;;  %s3292_s5 = inlined_call_operand.vmem [shape: f32[32,128], index: 5, kind: input, shape index: {}]   ;;  %s3293_s6 = inlined_call_operand.vmem [shape: f32[1,128], index: 6, kind: input, shape index: {}]   ;;  %s3294_s7 = inlined_call_operand.vmem [shape: f32[32,128], index: 7, kind: input, shape index: {}]   ;;  %s3295_s9 = inlined_call_operand.vmem [shape: f32[128,128], index: 9, kind: input, shape index: {}]   ;;  %s3296_s8 = inlined_call_operand.vmem [shape: f32[1,128], index: 8, kind: input, shape index: {}]   ;;  %s3297_s10 = inlined_call_operand.vmem [shape: f32[1,128], index: 10, kind: input, shape index: {}]   ;;  %s3298_s11 = inlined_call_operand.vmem [shape: f32[8,128], index: 11, kind: output, shape index: {}]  }
   0x1   :  { %v46_v0 = vld [vmem:[%s3287_s1] sm:$0xff]  ;;  %v47_v1 = vld [vmem:[%s3287_s1 + $0x8] sm:$0xff]  ;;  %2548 = vmatprep.subr.bf16.mxu1 %v2797_v3  ;;  %2325 = vmatprep.mubr.msk.f32.mxu1 %vm2798_vm1, %v2799_v4  ;;  %v187_v10 = vld [vmem:[%s3289_s2 + $0x10] sm:$0xff]  ;;  %s2801_s1 = smov 32   ;;  %vm189_vm2 = vcmask 261120  }
   0x2   :  { %v38_v2 = vld [vmem:[%s3288_s0] sm:$0xff]  ;;  %v2526_v5 = vpack.c.bf16 %v47_v1, %v46_v0  ;;  %v186_v7 = vld [vmem:[%s3289_s2 + $0x8] sm:$0xff]  ;;  %v188_v11 = vld [vmem:[%s3289_s2 + $0x18] sm:$0xff] }
   0x3   :  { %2272 = vmatprep.mubr.msk.f32.mxu0 %vm55_vm0, %v38_v2  ;;  %v185_v6 = vld [vmem:[%s3289_s2] sm:$0xff]  ;;  %v39_v9 = vld [vmem:[%s3288_s0 + $0x8] sm:$0xff]  ;;  %v40_v12 = vld [vmem:[%s3288_s0 + $0x10] sm:$0xff]  ;;  %v2899_v13 = vpack.c.bf16 %v188_v11, %v187_v10 }
   0x4   :  { %v2881_v8 = vpack.c.bf16 %v186_v7, %v185_v6  ;;  %2527 = vmatprep.subr.bf16.mxu0 %v2526_v5  ;;  %v41_v14 = vld [vmem:[%s3288_s0 + $0x18] sm:$0xff]  ;;  %v42_v15 = vld [vmem:[%s3288_s0 + $0x20] sm:$0xff]  ;;  %v43_v16 = vld [vmem:[%s3288_s0 + $0x28] sm:$0xff] }
   0x5   :  { %2529 = vmatpush3.bf16.msra.mxu0 %v2526_v5  ;;  %v44_v17 = vld [vmem:[%s3288_s0 + $0x30] sm:$0xff]  ;;  %v45_v18 = vld [vmem:[%s3288_s0 + $0x38] sm:$0xff]  ;;  %v2093_v19 = vld [vmem:[%s3290_s3] ss:$0 sm:$0xff]  ;;  %s2800_s3 = smov 64  }
   0x6   :  { %2550 = vmatpush3.bf16.msra.mxu1 %v2881_v8  ;;  %2530 = vmatprep.subr.bf16.mxu0 %v2797_v3 }
   0x7   :  { %2551 = vmatprep.subr.bf16.mxu1 %v2797_v3 }
   0x8   :  { %2273 = vmatmul.mubr.msk.f32.vlgmr.msra.gmra.mrb[0].mxu0 %vm55_vm0, %v39_v9 }
   0x9   :  { %2532 = vmatpush3.bf16.msra.mxu0 %v2881_v8  ;;  %2275 = vmatprep.mubr.msk.f32.mxu0 %vm55_vm0, %v40_v12 }
   0xa   :  { %2533 = vmatprep.subr.bf16.mxu0 %v2797_v3  ;;  %2553 = vmatpush3.bf16.msra.mxu1 %v2899_v13 }
   0xb   :  { %2560 = vmatprep.subr.bf16.mxu1 %v2797_v3 }
   0xc   :  { %2276 = vmatmul.mubr.msk.f32.gmra.mrb[2].mxu0 %vm55_vm0, %v41_v14 }
   0xd   :  { %2278 = vmatprep.mubr.msk.f32.mxu0 %vm55_vm0, %v42_v15  ;;  %2535 = vmatpush3.bf16.msra.mxu0 %v2899_v13 }
   0xe   :  { %2536 = vmatprep.subr.bf16.mxu0 %v2797_v3 }
  0x10   :  { %2279 = vmatmul.mubr.msk.f32.gmra.mrb[4].mxu0 %vm55_vm0, %v43_v16 }
  0x11   :  { %2281 = vmatprep.mubr.msk.f32.mxu0 %vm55_vm0, %v44_v17 }
  0x14   :  { %2282 = vmatmul.mubr.msk.f32.gmra.mrb[6].mxu0 %vm55_vm0, %v45_v18 }
  0x15   :  { %2292 = vmatprep.mubr.msk.f32.mxu0 %vm2798_vm1, %v2799_v4 }
  0x18   :  { %2293 = vmatmul.mubr.f32.vlgmr.msra.gmra.mrb[8].mxu0 %v2799_v4 }
  0x19   :  { %2538 = vmatpush3.bf16.msra.mxu0 %v2881_v8  ;;  %2303 = vmatprep.mubr.msk.f32.mxu0 %vm2798_vm1, %v2799_v4 }
  0x1a   :  { %2539 = vmatprep.subr.bf16.mxu0 %v2797_v3 }
  0x1d   :  { %2541 = vmatpush3.bf16.msra.mxu0 %v2899_v13 }
  0x1e   :  { %2542 = vmatprep.subr.bf16.mxu0 %v2797_v3 }
  0xdb   :  { %v2274_v20 = vpop.f32.mrb[0].mxu0 }
  0xdc   :  { %v152_v21 = vadd.f32 %v2274_v20, %v2093_v19  ;;  %v146_v22 = vpop.f32.mrb[1].mxu0 }
  0xdd   :  { %v147_v35 = vadd.f32 %v2093_v19, %v146_v22 }
  0xdf   :  { %v2277_v23 = vpop.f32.mrb[2].mxu0 }
  0xe0   :  { %v2940_v24 = vadd.f32 %v2277_v23, %v2093_v19  ;;  %v156_v25 = vpop.f32.mrb[3].mxu0 }
  0xe1   :  { %v2942_v26 = vadd.f32 %v2093_v19, %v156_v25 }
  0xe3   :  { %v2280_v27 = vpop.f32.mrb[4].mxu0 }
  0xe4   :  { %v2944_v28 = vadd.f32 %v2280_v27, %v2093_v19  ;;  %v166_v29 = vpop.f32.mrb[5].mxu0 }
  0xe5   :  { %v2946_v30 = vadd.f32 %v2093_v19, %v166_v29 }
  0xe7   :  { %v2283_v31 = vpop.f32.mrb[6].mxu0 }
  0xe8   :  { %v2948_v32 = vadd.f32 %v2283_v31, %v2093_v19  ;;  %v176_v33 = vpop.f32.mrb[7].mxu0 }
  0xe9   :  { %v2950_v34 = vadd.f32 %v2093_v19, %v176_v33 }
  0xeb   :  { %v259_v36 = vpop.f32.mrb[8].mxu0 }
  0xec   :  { %v263_v37 = vadd.f32 %v259_v36, %v147_v35  ;;  %v2294_v38 = vpop.f32.mrb[9].mxu0 }
  0xee   :  { %2669 = vtanh.f32 %v263_v37  ;;  %v2102_v40 = vmul.f32 -1.442695, %v263_v37 }
  0xf0   :  { %2671 = vpow2.f32 %v2102_v40 }
  0xf8   :  { %v2670_v39 = vpop.eup %2669 }
  0xf9   :  { %273 = vrot.lane.b32.xlu0 %v2670_v39, %s2800_s3 }
  0xfa   :  { %v2672_v41 = vpop.eup %2671 }
  0xfb   :  { %v267_v42 = vadd.f32 1.0, %v2672_v41 }
  0xfd   :  { %2673 = vrcp.f32 %v267_v42 }
 0x107   :  { %v2674_v43 = vpop.eup %2673 }
 0x108   :  { %v271_v46 = vmul.f32 0.0, %v2674_v43 }
 0x16b   :  { %v274_v44 = vpop.permute.xlu0 %273 }
 0x16c   :  { %v276_v45 = vmul.f32 %v2674_v43, %v274_v44 }
 0x16e   :  { %278 = vrot.lane.b32.xlu0 %v276_v45, %s2801_s1 }
 0x1e0   :  { %v279_v47 = vpop.permute.xlu0 %278 }
 0x1e1   :  { %v281_v48 = vadd.f32 %v279_v47, %v271_v46 }
 0x1e3   :  { %2675 = vtanh.f32 %v281_v48 }
 0x1ed   :  { %v2676_v49 = vpop.eup %2675 }
 0x1ee   :  { %284 = vrot.lane.b32.xlu1 %v2676_v49, %s2800_s3 }
 0x260   :  { %v285_v50 = vpop.permute.xlu1 %284 }
 0x261   :  { %v287_v51 = vmul.f32 %v2674_v43, %v285_v50 }
 0x263   :  { %289 = vrot.lane.b32.xlu1 %v287_v51, %s2801_s1 }
 0x2d5   :  { %v2956_v52 = vpop.permute.xlu1 %289 }
 0x2d6   :  { %2304 = vmatmul.mubr.msk.f32.vlgmr.msra.gmra.mrb[10].mxu0 %vm189_vm2, %v2956_v52 }
 0x2d7   :  { %2544 = vmatpush3.bf16.msra.mxu0 %v2881_v8  ;;  %2314 = vmatprep.mubr.msk.f32.mxu0 %vm2798_vm1, %v2799_v4 }
 0x2d8   :  { %2545 = vmatprep.subr.bf16.mxu0 %v2797_v3 }
 0x2db   :  { %2547 = vmatpush3.bf16.msra.mxu0 %v2899_v13 }
 0x2dc   :  { %2554 = vmatprep.subr.bf16.mxu0 %v2797_v3 }
 0x3a9   :  { %v359_v53 = vpop.f32.mrb[10].mxu0 }
 0x3aa   :  { %v363_v54 = vadd.f32 %v359_v53, %v152_v21  ;;  %v2305_v55 = vpop.f32.mrb[11].mxu0 }
 0x3ac   :  { %2677 = vtanh.f32 %v363_v54  ;;  %v2104_v57 = vmul.f32 -1.442695, %v363_v54 }
 0x3ae   :  { %2679 = vpow2.f32 %v2104_v57 }
 0x3b6   :  { %v2678_v56 = vpop.eup %2677 }
 0x3b7   :  { %373 = vrot.lane.b32.xlu0 %v2678_v56, %s2800_s3 }
 0x3b8   :  { %v2680_v58 = vpop.eup %2679 }
 0x3b9   :  { %v367_v59 = vadd.f32 1.0, %v2680_v58 }
 0x3bb   :  { %2681 = vrcp.f32 %v367_v59 }
 0x3c5   :  { %v2682_v60 = vpop.eup %2681 }
 0x3c6   :  { %v371_v63 = vmul.f32 %v2682_v60, %v281_v48 }
 0x429   :  { %v374_v61 = vpop.permute.xlu0 %373 }
 0x42a   :  { %v376_v62 = vmul.f32 %v2682_v60, %v374_v61 }
 0x42c   :  { %378 = vrot.lane.b32.xlu1 %v376_v62, %s2801_s1 }
 0x49e   :  { %v379_v0 = vpop.permute.xlu1 %378 }
 0x49f   :  { %v381_v1 = vadd.f32 %v379_v0, %v371_v63 }
 0x4a1   :  { %2683 = vtanh.f32 %v381_v1 }
 0x4ab   :  { %v2684_v2 = vpop.eup %2683 }
 0x4ac   :  { %384 = vrot.lane.b32.xlu0 %v2684_v2, %s2800_s3 }
 0x51e   :  { %v385_v5 = vpop.permute.xlu0 %384 }
 0x51f   :  { %v387_v6 = vmul.f32 %v2682_v60, %v385_v5 }
 0x521   :  { %389 = vrot.lane.b32.xlu1 %v387_v6, %s2801_s1 }
 0x593   :  { %v2970_v7 = vpop.permute.xlu1 %389 }
 0x594   :  { %2315 = vmatmul.mubr.msk.f32.vlgmr.msra.gmra.mrb[12].mxu0 %vm189_vm2, %v2970_v7 }
 0x595   :  { %2556 = vmatpush3.bf16.msra.mxu0 %v2881_v8  ;;  %2336 = vmatprep.mubr.msk.f32.mxu0 %vm2798_vm1, %v2799_v4 }
 0x596   :  { %2557 = vmatprep.subr.bf16.mxu0 %v2797_v3 }
 0x599   :  { %2559 = vmatpush3.bf16.msra.mxu0 %v2899_v13 }
 0x59a   :  { %2566 = vmatprep.subr.bf16.mxu0 %v2797_v3 }
 0x667   :  { %v459_v9 = vpop.f32.mrb[12].mxu0 }
 0x668   :  { %v463_v10 = vadd.f32 %v459_v9, %v2942_v26  ;;  %v2316_v11 = vpop.f32.mrb[13].mxu0 }
 0x66a   :  { %2685 = vtanh.f32 %v463_v10  ;;  %v2106_v14 = vmul.f32 -1.442695, %v463_v10 }
 0x66c   :  { %2687 = vpow2.f32 %v2106_v14 }
 0x674   :  { %v2686_v12 = vpop.eup %2685 }
 0x675   :  { %473 = vrot.lane.b32.xlu0 %v2686_v12, %s2800_s3 }
 0x676   :  { %v2688_v15 = vpop.eup %2687 }
 0x677   :  { %v467_v16 = vadd.f32 1.0, %v2688_v15 }
 0x679   :  { %2689 = vrcp.f32 %v467_v16 }
 0x683   :  { %v2690_v17 = vpop.eup %2689 }
 0x684   :  { %v471_v20 = vmul.f32 %v2690_v17, %v381_v1 }
 0x6e7   :  { %v474_v18 = vpop.permute.xlu0 %473 }
 0x6e8   :  { %v476_v19 = vmul.f32 %v2690_v17, %v474_v18 }
 0x6ea   :  { %478 = vrot.lane.b32.xlu1 %v476_v19, %s2801_s1 }
 0x75c   :  { %v479_v21 = vpop.permute.xlu1 %478 }
 0x75d   :  { %v481_v22 = vadd.f32 %v479_v21, %v471_v20 }
 0x75f   :  { %2691 = vtanh.f32 %v481_v22 }
 0x769   :  { %v2692_v23 = vpop.eup %2691 }
 0x76a   :  { %484 = vrot.lane.b32.xlu0 %v2692_v23, %s2800_s3  ;;  %v991_v23 = vld [vmem:[%s3291_s4 + $0x18] sm:$0xff] }
 0x7dc   :  { %v485_v25 = vpop.permute.xlu0 %484 }
 0x7dd   :  { %v487_v26 = vmul.f32 %v2690_v17, %v485_v25  ;;  %v989_v17 = vld [vmem:[%s3291_s4 + $0x8] sm:$0xff] }
 0x7df   :  { %489 = vrot.lane.b32.xlu1 %v487_v26, %s2801_s1 }
 0x851   :  { %v2985_v27 = vpop.permute.xlu1 %489 }
 0x852   :  { %2326 = vmatmul.mubr.msk.f32.vlgmr.msra.gmra.mrb[0].mxu1 %vm189_vm2, %v2985_v27 }
 0x853   :  { %2562 = vmatpush3.bf16.msra.mxu1 %v2881_v8  ;;  %2347 = vmatprep.mubr.msk.f32.mxu1 %vm2798_vm1, %v2799_v4 }
 0x854   :  { %2563 = vmatprep.subr.bf16.mxu1 %v2797_v3 }
 0x857   :  { %2565 = vmatpush3.bf16.msra.mxu1 %v2899_v13 }
 0x858   :  { %2572 = vmatprep.subr.bf16.mxu1 %v2797_v3 }
 0x925   :  { %v559_v29 = vpop.f32.mrb[0].mxu1 }
 0x926   :  { %v563_v31 = vadd.f32 %v559_v29, %v2940_v24  ;;  %v2327_v33 = vpop.f32.mrb[1].mxu1 }
 0x928   :  { %2693 = vtanh.f32 %v563_v31  ;;  %v2108_v36 = vmul.f32 -1.442695, %v563_v31 }
 0x92a   :  { %2695 = vpow2.f32 %v2108_v36 }
 0x932   :  { %v2694_v35 = vpop.eup %2693 }
 0x933   :  { %573 = vrot.lane.b32.xlu0 %v2694_v35, %s2800_s3 }
 0x934   :  { %v2696_v37 = vpop.eup %2695 }
 0x935   :  { %v567_v38 = vadd.f32 1.0, %v2696_v37 }
 0x937   :  { %2697 = vrcp.f32 %v567_v38 }
 0x941   :  { %v2698_v39 = vpop.eup %2697 }
 0x942   :  { %v571_v42 = vmul.f32 %v2698_v39, %v481_v22  ;;  %v990_v22 = vld [vmem:[%s3291_s4 + $0x10] sm:$0xff] }
 0x943   :  { %v2582_v25 = vpack.c.bf16 %v991_v23, %v990_v22 }
 0x9a5   :  { %v574_v40 = vpop.permute.xlu0 %573 }
 0x9a6   :  { %v576_v41 = vmul.f32 %v2698_v39, %v574_v40 }
 0x9a8   :  { %578 = vrot.lane.b32.xlu1 %v576_v41, %s2801_s1 }
 0xa1a   :  { %v579_v43 = vpop.permute.xlu1 %578 }
 0xa1b   :  { %v581_v44 = vadd.f32 %v579_v43, %v571_v42 }
 0xa1d   :  { %2699 = vtanh.f32 %v581_v44 }
 0xa27   :  { %v2700_v24 = vpop.eup %2699 }
 0xa28   :  { %584 = vrot.lane.b32.xlu0 %v2700_v24, %s2800_s3 }
 0xa9a   :  { %v585_v45 = vpop.permute.xlu0 %584 }
 0xa9b   :  { %v587_v46 = vmul.f32 %v2698_v39, %v585_v45 }
 0xa9d   :  { %589 = vrot.lane.b32.xlu1 %v587_v46, %s2801_s1 }
 0xb0f   :  { %v3000_v47 = vpop.permute.xlu1 %589 }
 0xb10   :  { %2337 = vmatmul.mubr.msk.f32.vlgmr.msra.gmra.mrb[14].mxu0 %vm189_vm2, %v3000_v47 }
 0xb11   :  { %2568 = vmatpush3.bf16.msra.mxu0 %v2881_v8  ;;  %2358 = vmatprep.mubr.msk.f32.mxu0 %vm2798_vm1, %v2799_v4 }
 0xb12   :  { %2569 = vmatprep.subr.bf16.mxu0 %v2797_v3 }
 0xb15   :  { %2571 = vmatpush3.bf16.msra.mxu0 %v2899_v13 }
 0xbe3   :  { %v659_v48 = vpop.f32.mrb[14].mxu0 }
 0xbe4   :  { %v663_v49 = vadd.f32 %v659_v48, %v2946_v30  ;;  %v2338_v50 = vpop.f32.mrb[15].mxu0  ;;  %v1110_v48 = vld [vmem:[%s3292_s5 + $0x8] sm:$0xff] }
 0xbe5   :  { %v1111_v50 = vld [vmem:[%s3292_s5 + $0x10] sm:$0xff] }
 0xbe6   :  { %2701 = vtanh.f32 %v663_v49  ;;  %v2110_v53 = vmul.f32 -1.442695, %v663_v49 }
 0xbe8   :  { %2703 = vpow2.f32 %v2110_v53 }
 0xbf0   :  { %v2702_v51 = vpop.eup %2701 }
 0xbf1   :  { %673 = vrot.lane.b32.xlu0 %v2702_v51, %s2800_s3  ;;  %v1112_v51 = vld [vmem:[%s3292_s5 + $0x18] sm:$0xff] }
 0xbf2   :  { %v2704_v54 = vpop.eup %2703  ;;  %v3083_v53 = vpack.c.bf16 %v1112_v51, %v1111_v50 }
 0xbf3   :  { %v667_v55 = vadd.f32 1.0, %v2704_v54 }
 0xbf5   :  { %2705 = vrcp.f32 %v667_v55 }
 0xbff   :  { %v2706_v56 = vpop.eup %2705 }
 0xc00   :  { %v671_v59 = vmul.f32 %v2706_v56, %v581_v44 }
 0xc63   :  { %v674_v57 = vpop.permute.xlu0 %673 }
 0xc64   :  { %v676_v58 = vmul.f32 %v2706_v56, %v674_v57 }
 0xc66   :  { %678 = vrot.lane.b32.xlu1 %v676_v58, %s2801_s1 }
 0xcd8   :  { %v679_v60 = vpop.permute.xlu1 %678 }
 0xcd9   :  { %v681_v61 = vadd.f32 %v679_v60, %v671_v59  ;;  %v3107_v60 = vld [vmem:[%s3293_s6] ss:$0 sm:$0xff] }
 0xcdb   :  { %2707 = vtanh.f32 %v681_v61 }
 0xce5   :  { %v2708_v30 = vpop.eup %2707 }
 0xce6   :  { %684 = vrot.lane.b32.xlu0 %v2708_v30, %s2800_s3 }
 0xd58   :  { %v685_v62 = vpop.permute.xlu0 %684 }
 0xd59   :  { %v687_v63 = vmul.f32 %v2706_v56, %v685_v62 }
 0xd5b   :  { %689 = vrot.lane.b32.xlu1 %v687_v63, %s2801_s1 }
 0xdcd   :  { %v690_v0 = vpop.permute.xlu1 %689 }
 0xdce   :  { %2348 = vmatmul.mubr.msk.f32.vlgmr.msra.gmra.mrb[2].mxu1 %vm189_vm2, %v690_v0 }
 0xdcf   :  { %2574 = vmatpush3.bf16.msra.mxu1 %v2881_v8  ;;  %2369 = vmatprep.mubr.msk.f32.mxu1 %vm2798_vm1, %v2799_v4 }
 0xdd0   :  { %2575 = vmatprep.subr.bf16.mxu1 %v2797_v3 }
 0xdd3   :  { %2577 = vmatpush3.bf16.msra.mxu1 %v2899_v13 }
 0xdd4   :  { %2586 = vmatprep.subr.bf16.mxu1 %v2797_v3 }
 0xea1   :  { %v759_v1 = vpop.f32.mrb[2].mxu1 }
 0xea2   :  { %v763_v2 = vadd.f32 %v759_v1, %v2944_v28  ;;  %v2349_v5 = vpop.f32.mrb[3].mxu1  ;;  %v988_v28 = vld [vmem:[%s3291_s4] sm:$0xff] }
 0xea3   :  { %v2578_v18 = vpack.c.bf16 %v989_v17, %v988_v28 }
 0xea4   :  { %2709 = vtanh.f32 %v763_v2  ;;  %v2112_v9 = vmul.f32 -1.442695, %v763_v2 }
 0xea5   :  { %2579 = vmatprep.subr.bf16.mxu0 %v2578_v18 }
 0xea6   :  { %2711 = vpow2.f32 %v2112_v9 }
 0xeae   :  { %v2710_v6 = vpop.eup %2709 }
 0xeaf   :  { %773 = vrot.lane.b32.xlu0 %v2710_v6, %s2800_s3 }
 0xeb0   :  { %v2712_v8 = vpop.eup %2711 }
 0xeb1   :  { %v767_v10 = vadd.f32 1.0, %v2712_v8 }
 0xeb3   :  { %2713 = vrcp.f32 %v767_v10 }
 0xebd   :  { %v2714_v11 = vpop.eup %2713 }
 0xebe   :  { %v771_v13 = vmul.f32 %v2714_v11, %v681_v61 }
 0xf21   :  { %v774_v12 = vpop.permute.xlu0 %773 }
 0xf22   :  { %v776_v14 = vmul.f32 %v2714_v11, %v774_v12 }
 0xf24   :  { %778 = vrot.lane.b32.xlu1 %v776_v14, %s2801_s1 }
 0xf96   :  { %v779_v15 = vpop.permute.xlu1 %778 }
 0xf97   :  { %v781_v16 = vadd.f32 %v779_v15, %v771_v13 }
 0xf99   :  { %2715 = vtanh.f32 %v781_v16 }
 0xfa3   :  { %v2716_v19 = vpop.eup %2715 }
 0xfa4   :  { %784 = vrot.lane.b32.xlu0 %v2716_v19, %s2800_s3 }
0x1016   :  { %v785_v20 = vpop.permute.xlu0 %784 }
0x1017   :  { %v787_v21 = vmul.f32 %v2714_v11, %v785_v20 }
0x1019   :  { %789 = vrot.lane.b32.xlu1 %v787_v21, %s2801_s1 }
0x108b   :  { %v790_v26 = vpop.permute.xlu1 %789 }
0x108c   :  { %2359 = vmatmul.mubr.msk.f32.vlgmr.msra.gmra.mrb[16].mxu0 %vm189_vm2, %v790_v26 }
0x108d   :  { %2581 = vmatpush3.bf16.msra.mxu0 %v2578_v18  ;;  %2380 = vmatprep.mubr.msk.f32.mxu0 %vm189_vm2, %v2956_v52 }
0x108e   :  { %2583 = vmatprep.subr.bf16.mxu0 %v2582_v25 }
0x1091   :  { %2585 = vmatpush3.bf16.msra.mxu0 %v2582_v25 }
0x1092   :  { %2598 = vmatprep.subr.bf16.mxu0 %v2797_v3 }
0x1094   :  { %2381 = vmatmul.mubr.msk.f32.vlgmr.msra.gmra.mrb[18].mxu0 %vm189_vm2, %v2970_v7 }
0x1095   :  { %2383 = vmatprep.mubr.msk.f32.mxu0 %vm189_vm2, %v2985_v27 }
0x1098   :  { %2384 = vmatmul.mubr.msk.f32.gmra.mrb[20].mxu0 %vm189_vm2, %v3000_v47  ;;  %v1109_v47 = vld [vmem:[%s3292_s5] sm:$0xff] }
0x1099   :  { %2386 = vmatprep.mubr.msk.f32.mxu0 %vm189_vm2, %v690_v0  ;;  %v3073_v49 = vpack.c.bf16 %v1110_v48, %v1109_v47 }
0x109b   :  { %2600 = vmatpush3.bf16.msra.mxu0 %v3073_v49 }
0x109c   :  { %2387 = vmatmul.mubr.msk.f32.gmra.mrb[22].mxu0 %vm189_vm2, %v790_v26  ;;  %2601 = vmatprep.subr.bf16.mxu0 %v2797_v3 }
0x109f   :  { %2603 = vmatpush3.bf16.msra.mxu0 %v3083_v53 }
0x10a0   :  { %2610 = vmatprep.subr.bf16.mxu0 %v2797_v3 }
0x115f   :  { %v859_v29 = vpop.f32.mrb[16].mxu0 }
0x1160   :  { %v863_v52 = vadd.f32 %v859_v29, %v2950_v34  ;;  %v2360_v31 = vpop.f32.mrb[17].mxu0 }
0x1162   :  { %2717 = vtanh.f32 %v863_v52  ;;  %v2114_v39 = vmul.f32 -1.442695, %v863_v52 }
0x1164   :  { %2719 = vpow2.f32 %v2114_v39 }
0x1167   :  { %v3051_v33 = vpop.f32.mrb[18].mxu0 }
0x1168   :  { %v1070_v35 = vpop.f32.mrb[19].mxu0  ;;  %v1076_v31 = vadd.f32 %v3051_v33, %v3107_v60 }
0x1169   :  { %v1071_v61 = vadd.f32 %v3107_v60, %v1070_v35 }
0x116b   :  { %v3053_v36 = vpop.f32.mrb[20].mxu0 }
0x116c   :  { %v2718_v7 = vpop.eup %2717  ;;  %v3055_v37 = vpop.f32.mrb[21].mxu0 }
0x116d   :  { %873 = vrot.lane.b32.xlu0 %v2718_v7, %s2800_s3 }
0x116e   :  { %v2720_v40 = vpop.eup %2719 }
0x116f   :  { %v3058_v27 = vpop.f32.mrb[22].mxu0  ;;  %v867_v34 = vadd.f32 1.0, %v2720_v40 }
0x1170   :  { %v3060_v38 = vpop.f32.mrb[23].mxu0 }
0x1171   :  { %2721 = vrcp.f32 %v867_v34 }
0x117b   :  { %v2722_v41 = vpop.eup %2721 }
0x117c   :  { %v871_v44 = vmul.f32 %v2722_v41, %v781_v16 }
0x11df   :  { %v874_v42 = vpop.permute.xlu0 %873 }
0x11e0   :  { %v876_v43 = vmul.f32 %v2722_v41, %v874_v42 }
0x11e2   :  { %878 = vrot.lane.b32.xlu1 %v876_v43, %s2801_s1 }
0x1254   :  { %v879_v24 = vpop.permute.xlu1 %878 }
0x1255   :  { %v3063_v45 = vadd.f32 %v879_v24, %v871_v44 }
0x1257   :  { %2723 = vtanh.f32 %v3063_v45 }
0x1261   :  { %v2724_v46 = vpop.eup %2723 }
0x1262   :  { %884 = vrot.lane.b32.xlu0 %v2724_v46, %s2800_s3 }
0x12d4   :  { %v885_v54 = vpop.permute.xlu0 %884 }
0x12d5   :  { %v887_v55 = vmul.f32 %v2722_v41, %v885_v54 }
0x12d7   :  { %889 = vrot.lane.b32.xlu1 %v887_v55, %s2801_s1 }
0x1349   :  { %v890_v56 = vpop.permute.xlu1 %889 }
0x134a   :  { %2370 = vmatmul.mubr.msk.f32.vlgmr.msra.gmra.mrb[4].mxu1 %vm189_vm2, %v890_v56  ;;  %2389 = vmatprep.mubr.msk.f32.mxu0 %vm189_vm2, %v890_v56 }
0x134b   :  { %2588 = vmatpush3.bf16.msra.mxu1 %v3073_v49  ;;  %2400 = vmatprep.mubr.msk.f32.mxu1 %vm2798_vm1, %v2799_v4 }
0x134c   :  { %2589 = vmatprep.subr.bf16.mxu1 %v2797_v3 }
0x134f   :  { %2591 = vmatpush3.bf16.msra.mxu1 %v3083_v53 }
0x1350   :  { %2592 = vmatprep.subr.bf16.mxu1 %v2797_v3 }
0x1352   :  { %2401 = vmatmul.mubr.f32.vlgmr.msra.gmra.mrb[6].mxu1 %v2799_v4 }
0x1353   :  { %2594 = vmatpush3.bf16.msra.mxu1 %v3073_v49  ;;  %2411 = vmatprep.mubr.msk.f32.mxu1 %vm2798_vm1, %v2799_v4 }
0x1354   :  { %2595 = vmatprep.subr.bf16.mxu1 %v2797_v3 }
0x1357   :  { %2597 = vmatpush3.bf16.msra.mxu1 %v3083_v53 }
0x1358   :  { %2604 = vmatprep.subr.bf16.mxu1 %v2797_v3 }
0x141d   :  { %v959_v57 = vpop.f32.mrb[4].mxu1 }
0x141e   :  { %v963_v58 = vadd.f32 %v959_v57, %v2948_v32  ;;  %v2371_v59 = vpop.f32.mrb[5].mxu1  ;;  %v1081_v57 = vadd.f32 %v3107_v60, %v3055_v37 }
0x1420   :  { %v2116_v13 = vmul.f32 -1.442695, %v963_v58 }
0x1425   :  { %v1179_v30 = vpop.f32.mrb[6].mxu1 }
0x1426   :  { %v1183_v62 = vadd.f32 %v1179_v30, %v1071_v61  ;;  %v2402_v63 = vpop.f32.mrb[7].mxu1 }
0x1428   :  { %2725 = vtanh.f32 %v1183_v62  ;;  %v2126_v1 = vmul.f32 -1.442695, %v1183_v62 }
0x142a   :  { %2727 = vpow2.f32 %v2126_v1 }
0x1432   :  { %v2726_v0 = vpop.eup %2725 }
0x1433   :  { %1193 = vrot.lane.b32.xlu0 %v2726_v0, %s2800_s3 }
0x1434   :  { %v2728_v2 = vpop.eup %2727 }
0x1435   :  { %v1187_v5 = vadd.f32 1.0, %v2728_v2 }
0x1437   :  { %2729 = vrcp.f32 %v1187_v5 }
0x1441   :  { %v2730_v32 = vpop.eup %2729 }
0x1442   :  { %v1191_v8 = vmul.f32 0.0, %v2730_v32 }
0x14a5   :  { %v1194_v6 = vpop.permute.xlu0 %1193 }
0x14a6   :  { %v1196_v9 = vmul.f32 %v2730_v32, %v1194_v6 }
0x14a8   :  { %1198 = vrot.lane.b32.xlu1 %v1196_v9, %s2801_s1 }
0x151a   :  { %v1199_v10 = vpop.permute.xlu1 %1198 }
0x151b   :  { %v1201_v11 = vadd.f32 %v1199_v10, %v1191_v8 }
0x151d   :  { %2731 = vtanh.f32 %v1201_v11 }
0x151e   :  { %2733 = vtanh.f32 %v963_v58 }
0x151f   :  { %2735 = vpow2.f32 %v2116_v13 }
0x1527   :  { %v2732_v12 = vpop.eup %2731 }
0x1528   :  { %1204 = vrot.lane.b32.xlu0 %v2732_v12, %s2800_s3  ;;  %v2734_v14 = vpop.eup %2733  ;;  %v1086_v12 = vadd.f32 %v3053_v36, %v3107_v60 }
0x1529   :  { %v2736_v15 = vpop.eup %2735 }
0x152a   :  { %v967_v16 = vadd.f32 1.0, %v2736_v15 }
0x152c   :  { %973 = vrot.lane.b32.xlu0 %v2734_v14, %s2800_s3  ;;  %2737 = vrcp.f32 %v967_v16 }
0x1536   :  { %v2738_v18 = vpop.eup %2737 }
0x1537   :  { %v971_v22 = vmul.f32 %v2738_v18, %v3063_v45 }
0x159a   :  { %v1205_v28 = vpop.permute.xlu0 %1204 }
0x159b   :  { %v1207_v17 = vmul.f32 %v2730_v32, %v1205_v28 }
0x159d   :  { %1209 = vrot.lane.b32.xlu1 %v1207_v17, %s2801_s1 }
0x159e   :  { %v974_v19 = vpop.permute.xlu0 %973 }
0x159f   :  { %v976_v20 = vmul.f32 %v2738_v18, %v974_v19 }
0x15a1   :  { %978 = vrot.lane.b32.xlu0 %v976_v20, %s2801_s1 }
0x160f   :  { %v1210_v21 = vpop.permute.xlu1 %1209 }
0x1610   :  { %2412 = vmatmul.mubr.msk.f32.vlgmr.msra.gmra.mrb[8].mxu1 %vm189_vm2, %v1210_v21 }
0x1611   :  { %2606 = vmatpush3.bf16.msra.mxu1 %v3073_v49  ;;  %2433 = vmatprep.mubr.msk.f32.mxu1 %vm2798_vm1, %v2799_v4 }
0x1612   :  { %2607 = vmatprep.subr.bf16.mxu1 %v2797_v3 }
0x1613   :  { %v979_v23 = vpop.permute.xlu0 %978 }
0x1614   :  { %v981_v25 = vadd.f32 %v979_v23, %v971_v22 }
0x1615   :  { %2609 = vmatpush3.bf16.msra.mxu1 %v3083_v53 }
0x1616   :  { %2739 = vtanh.f32 %v981_v25  ;;  %2616 = vmatprep.subr.bf16.mxu1 %v2797_v3 }
0x1620   :  { %v2740_v26 = vpop.eup %2739 }
0x1621   :  { %984 = vrot.lane.b32.xlu0 %v2740_v26, %s2800_s3 }
0x1693   :  { %v985_v29 = vpop.permute.xlu0 %984 }
0x1694   :  { %v987_v52 = vmul.f32 %v2738_v18, %v985_v29 }
0x1696   :  { %1000 = vrot.lane.b32.xlu0 %v987_v52, %s2801_s1 }
0x16e3   :  { %v1279_v35 = vpop.f32.mrb[8].mxu1 }
0x16e4   :  { %v1283_v7 = vadd.f32 %v1279_v35, %v1076_v31  ;;  %v2413_v39 = vpop.f32.mrb[9].mxu1  ;;  %v1091_v31 = vadd.f32 %v3107_v60, %v3060_v38 }
0x16e6   :  { %2741 = vtanh.f32 %v1283_v7  ;;  %v2128_v41 = vmul.f32 -1.442695, %v1283_v7 }
0x16e8   :  { %2743 = vpow2.f32 %v2128_v41 }
0x16f0   :  { %v2742_v40 = vpop.eup %2741 }
0x16f1   :  { %1293 = vrot.lane.b32.xlu1 %v2742_v40, %s2800_s3 }
0x16f2   :  { %v2744_v42 = vpop.eup %2743 }
0x16f3   :  { %v1287_v43 = vadd.f32 1.0, %v2744_v42 }
0x16f5   :  { %2745 = vrcp.f32 %v1287_v43 }
0x16ff   :  { %v2746_v44 = vpop.eup %2745 }
0x1700   :  { %v1291_v45 = vmul.f32 %v2746_v44, %v1201_v11 }
0x1708   :  { %v1001_v34 = vpop.permute.xlu0 %1000 }
0x1709   :  { %2390 = vmatmul.mubr.msk.f32.gmra.mrb[24].mxu0 %vm189_vm2, %v1001_v34 }
0x170a   :  { %2422 = vmatprep.mubr.msk.f32.mxu0 %vm2798_vm1, %v2799_v4 }
0x1763   :  { %v1294_v33 = vpop.permute.xlu1 %1293 }
0x1764   :  { %v1296_v24 = vmul.f32 %v2746_v44, %v1294_v33 }
0x1766   :  { %1298 = vrot.lane.b32.xlu1 %v1296_v24, %s2801_s1 }
0x17d8   :  { %v1299_v46 = vpop.permute.xlu1 %1298 }
0x17d9   :  { %v1301_v47 = vadd.f32 %v1299_v46, %v1291_v45 }
0x17db   :  { %2747 = vtanh.f32 %v1301_v47 }
0x17dc   :  { %v3133_v48 = vpop.f32.mrb[24].mxu0 }
0x17dd   :  { %v3135_v50 = vpop.f32.mrb[25].mxu0 }
0x17e5   :  { %v2748_v51 = vpop.eup %2747 }
0x17e6   :  { %1304 = vrot.lane.b32.xlu1 %v2748_v51, %s2800_s3 }
0x1858   :  { %v1305_v54 = vpop.permute.xlu1 %1304 }
0x1859   :  { %v1307_v55 = vmul.f32 %v2746_v44, %v1305_v54 }
0x185b   :  { %1309 = vrot.lane.b32.xlu1 %v1307_v55, %s2801_s1  ;;  %v1096_v55 = vadd.f32 %v3058_v27, %v3107_v60 }
0x18cd   :  { %v1310_v56 = vpop.permute.xlu1 %1309 }
0x18ce   :  { %2423 = vmatmul.mubr.msk.f32.vlgmr.msra.gmra.mrb[26].mxu0 %vm189_vm2, %v1310_v56 }
0x18cf   :  { %2612 = vmatpush3.bf16.msra.mxu0 %v3073_v49  ;;  %2444 = vmatprep.mubr.msk.f32.mxu0 %vm2798_vm1, %v2799_v4 }
0x18d0   :  { %2613 = vmatprep.subr.bf16.mxu0 %v2797_v3 }
0x18d3   :  { %2615 = vmatpush3.bf16.msra.mxu0 %v3083_v53 }
0x18d4   :  { %2622 = vmatprep.subr.bf16.mxu0 %v2797_v3 }
0x19a1   :  { %v1379_v58 = vpop.f32.mrb[26].mxu0 }
0x19a2   :  { %v1383_v59 = vadd.f32 %v1379_v58, %v1081_v57  ;;  %v2424_v61 = vpop.f32.mrb[27].mxu0 }
0x19a4   :  { %2749 = vtanh.f32 %v1383_v59  ;;  %v2130_v62 = vmul.f32 -1.442695, %v1383_v59 }
0x19a6   :  { %2751 = vpow2.f32 %v2130_v62 }
0x19ae   :  { %v2750_v30 = vpop.eup %2749 }
0x19af   :  { %1393 = vrot.lane.b32.xlu0 %v2750_v30, %s2800_s3 }
0x19b0   :  { %v2752_v63 = vpop.eup %2751 }
0x19b1   :  { %v1387_v0 = vadd.f32 1.0, %v2752_v63 }
0x19b3   :  { %2753 = vrcp.f32 %v1387_v0 }
0x19bd   :  { %v2754_v1 = vpop.eup %2753 }
0x19be   :  { %v1391_v32 = vmul.f32 %v2754_v1, %v1301_v47 }
0x1a21   :  { %v1394_v2 = vpop.permute.xlu0 %1393 }
0x1a22   :  { %v1396_v5 = vmul.f32 %v2754_v1, %v1394_v2 }
0x1a24   :  { %1398 = vrot.lane.b32.xlu1 %v1396_v5, %s2801_s1 }
0x1a96   :  { %v1399_v6 = vpop.permute.xlu1 %1398 }
0x1a97   :  { %v1401_v37 = vadd.f32 %v1399_v6, %v1391_v32 }
0x1a99   :  { %2755 = vtanh.f32 %v1401_v37 }
0x1aa3   :  { %v2756_v9 = vpop.eup %2755 }
0x1aa4   :  { %1404 = vrot.lane.b32.xlu0 %v2756_v9, %s2800_s3 }
0x1b16   :  { %v1405_v8 = vpop.permute.xlu0 %1404 }
0x1b17   :  { %v1407_v10 = vmul.f32 %v2754_v1, %v1405_v8 }
0x1b19   :  { %1409 = vrot.lane.b32.xlu1 %v1407_v10, %s2801_s1 }
0x1b8b   :  { %v1410_v11 = vpop.permute.xlu1 %1409 }
0x1b8c   :  { %2434 = vmatmul.mubr.msk.f32.vlgmr.msra.gmra.mrb[10].mxu1 %vm189_vm2, %v1410_v11 }
0x1b8d   :  { %2618 = vmatpush3.bf16.msra.mxu1 %v3073_v49  ;;  %2455 = vmatprep.mubr.msk.f32.mxu1 %vm2798_vm1, %v2799_v4 }
0x1b8e   :  { %2619 = vmatprep.subr.bf16.mxu1 %v2797_v3 }
0x1b91   :  { %2621 = vmatpush3.bf16.msra.mxu1 %v3083_v53 }
0x1b92   :  { %2628 = vmatprep.subr.bf16.mxu1 %v2797_v3 }
0x1c5f   :  { %v1479_v14 = vpop.f32.mrb[10].mxu1 }
0x1c60   :  { %v1483_v13 = vadd.f32 %v1479_v14, %v1086_v12  ;;  %v2435_v15 = vpop.f32.mrb[11].mxu1 }
0x1c62   :  { %2757 = vtanh.f32 %v1483_v13  ;;  %v2132_v28 = vmul.f32 -1.442695, %v1483_v13 }
0x1c64   :  { %2759 = vpow2.f32 %v2132_v28 }
0x1c6c   :  { %v2758_v16 = vpop.eup %2757 }
0x1c6d   :  { %1493 = vrot.lane.b32.xlu0 %v2758_v16, %s2800_s3 }
0x1c6e   :  { %v2760_v17 = vpop.eup %2759 }
0x1c6f   :  { %v1487_v18 = vadd.f32 1.0, %v2760_v17 }
0x1c71   :  { %2761 = vrcp.f32 %v1487_v18 }
0x1c7b   :  { %v2762_v19 = vpop.eup %2761 }
0x1c7c   :  { %v1491_v22 = vmul.f32 %v2762_v19, %v1401_v37  ;;  %v1101_v37 = vadd.f32 %v3107_v60, %v3135_v50 }
0x1cdf   :  { %v1494_v20 = vpop.permute.xlu0 %1493 }
0x1ce0   :  { %v1496_v21 = vmul.f32 %v2762_v19, %v1494_v20 }
0x1ce2   :  { %1498 = vrot.lane.b32.xlu1 %v1496_v21, %s2801_s1 }
0x1d54   :  { %v1499_v23 = vpop.permute.xlu1 %1498 }
0x1d55   :  { %v1501_v36 = vadd.f32 %v1499_v23, %v1491_v22  ;;  %v1106_v23 = vadd.f32 %v3133_v48, %v3107_v60  ;;  %v1908_v48 = vld [vmem:[%s3294_s7] sm:$0xff] }
0x1d57   :  { %2763 = vtanh.f32 %v1501_v36 }
0x1d61   :  { %v2764_v25 = vpop.eup %2763 }
0x1d62   :  { %1504 = vrot.lane.b32.xlu0 %v2764_v25, %s2800_s3 }
0x1dd4   :  { %v1505_v26 = vpop.permute.xlu0 %1504 }
0x1dd5   :  { %v1507_v29 = vmul.f32 %v2762_v19, %v1505_v26 }
0x1dd7   :  { %1509 = vrot.lane.b32.xlu1 %v1507_v29, %s2801_s1 }
0x1e49   :  { %v1510_v52 = vpop.permute.xlu1 %1509 }
0x1e4a   :  { %2445 = vmatmul.mubr.msk.f32.vlgmr.msra.gmra.mrb[28].mxu0 %vm189_vm2, %v1510_v52 }
0x1e4b   :  { %2624 = vmatpush3.bf16.msra.mxu0 %v3073_v49  ;;  %2466 = vmatprep.mubr.msk.f32.mxu0 %vm2798_vm1, %v2799_v4 }
0x1e4c   :  { %2625 = vmatprep.subr.bf16.mxu0 %v2797_v3 }
0x1e4f   :  { %2627 = vmatpush3.bf16.msra.mxu0 %v3083_v53 }
0x1e50   :  { %2634 = vmatprep.subr.bf16.mxu0 %v2797_v3 }
0x1f1d   :  { %v1579_v35 = vpop.f32.mrb[28].mxu0 }
0x1f1e   :  { %v1583_v7 = vadd.f32 %v1579_v35, %v1091_v31  ;;  %v2446_v39 = vpop.f32.mrb[29].mxu0 }
0x1f20   :  { %2765 = vtanh.f32 %v1583_v7  ;;  %v2134_v34 = vmul.f32 -1.442695, %v1583_v7 }
0x1f22   :  { %2767 = vpow2.f32 %v2134_v34 }
0x1f2a   :  { %v2766_v40 = vpop.eup %2765 }
0x1f2b   :  { %1593 = vrot.lane.b32.xlu0 %v2766_v40, %s2800_s3 }
0x1f2c   :  { %v2768_v41 = vpop.eup %2767 }
0x1f2d   :  { %v1587_v42 = vadd.f32 1.0, %v2768_v41  ;;  %v1909_v41 = vld [vmem:[%s3294_s7 + $0x8] sm:$0xff] }
0x1f2f   :  { %2769 = vrcp.f32 %v1587_v42  ;;  %v1910_v42 = vld [vmem:[%s3294_s7 + $0x10] sm:$0xff] }
0x1f39   :  { %v2770_v43 = vpop.eup %2769 }
0x1f3a   :  { %v1591_v24 = vmul.f32 %v2770_v43, %v1501_v36 }
0x1f9d   :  { %v1594_v44 = vpop.permute.xlu0 %1593 }
0x1f9e   :  { %v1596_v33 = vmul.f32 %v2770_v43, %v1594_v44  ;;  %v1911_v44 = vld [vmem:[%s3294_s7 + $0x18] sm:$0xff] }
0x1fa0   :  { %1598 = vrot.lane.b32.xlu1 %v1596_v33, %s2801_s1  ;;  %v2638_v33 = vpack.c.bf16 %v1911_v44, %v1910_v42 }
0x2012   :  { %v1599_v45 = vpop.permute.xlu1 %1598 }
0x2013   :  { %v1601_v38 = vadd.f32 %v1599_v45, %v1591_v24  ;;  %v1995_v45 = vld [vmem:[%s3295_s9] sm:$0xff] }
0x2015   :  { %2771 = vtanh.f32 %v1601_v38 }
0x201f   :  { %v2772_v46 = vpop.eup %2771 }
0x2020   :  { %1604 = vrot.lane.b32.xlu0 %v2772_v46, %s2800_s3  ;;  %v1997_v46 = vld [vmem:[%s3295_s9 + $0x10] sm:$0xff] }
0x2092   :  { %v1605_v47 = vpop.permute.xlu0 %1604 }
0x2093   :  { %v1607_v51 = vmul.f32 %v2770_v43, %v1605_v47  ;;  %v2635_v43 = vpack.c.bf16 %v1909_v41, %v1908_v48 }
0x2095   :  { %1609 = vrot.lane.b32.xlu1 %v1607_v51, %s2801_s1  ;;  %v1998_v51 = vld [vmem:[%s3295_s9 + $0x18] sm:$0xff] }
0x2107   :  { %v1610_v54 = vpop.permute.xlu1 %1609 }
0x2108   :  { %2456 = vmatmul.mubr.msk.f32.vlgmr.msra.gmra.mrb[12].mxu1 %vm189_vm2, %v1610_v54  ;;  %v2644_v54 = vpack.c.bf16 %v1998_v51, %v1997_v46 }
0x2109   :  { %2630 = vmatpush3.bf16.msra.mxu1 %v3073_v49  ;;  %2477 = vmatprep.mubr.msk.f32.mxu1 %vm2798_vm1, %v2799_v4 }
0x210a   :  { %2631 = vmatprep.subr.bf16.mxu1 %v2797_v3 }
0x210d   :  { %2633 = vmatpush3.bf16.msra.mxu1 %v3083_v53 }
0x210e   :  { %2640 = vmatprep.subr.bf16.mxu1 %v2797_v3 }
0x21db   :  { %v1679_v56 = vpop.f32.mrb[12].mxu1 }
0x21dc   :  { %v1683_v57 = vadd.f32 %v1679_v56, %v1096_v55  ;;  %v2457_v58 = vpop.f32.mrb[13].mxu1  ;;  %v1999_v55 = vld [vmem:[%s3295_s9 + $0x20] sm:$0xff]  ;;  %v2000_v56 = vld [vmem:[%s3295_s9 + $0x28] sm:$0xff] }
0x21dd   :  { %v2001_v58 = vld [vmem:[%s3295_s9 + $0x30] sm:$0xff] }
0x21de   :  { %2773 = vtanh.f32 %v1683_v57  ;;  %v2136_v49 = vmul.f32 -1.442695, %v1683_v57  ;;  %v2647_v57 = vpack.c.bf16 %v2000_v56, %v1999_v55 }
0x21e0   :  { %2775 = vpow2.f32 %v2136_v49 }
0x21e8   :  { %v2774_v59 = vpop.eup %2773 }
0x21e9   :  { %1693 = vrot.lane.b32.xlu0 %v2774_v59, %s2800_s3  ;;  %v2002_v59 = vld [vmem:[%s3295_s9 + $0x38] sm:$0xff] }
0x21ea   :  { %v2776_v61 = vpop.eup %2775 }
0x21eb   :  { %v1687_v30 = vadd.f32 1.0, %v2776_v61 }
0x21ed   :  { %2777 = vrcp.f32 %v1687_v30  ;;  %v2650_v30 = vpack.c.bf16 %v2002_v59, %v2001_v58 }
0x21f7   :  { %v2778_v62 = vpop.eup %2777 }
0x21f8   :  { %v1691_v0 = vmul.f32 %v2778_v62, %v1601_v38  ;;  %v1996_v38 = vld [vmem:[%s3295_s9 + $0x8] sm:$0xff] }
0x21f9   :  { %v2641_v47 = vpack.c.bf16 %v1996_v38, %v1995_v45 }
0x225b   :  { %v1694_v63 = vpop.permute.xlu0 %1693 }
0x225c   :  { %v1696_v53 = vmul.f32 %v2778_v62, %v1694_v63  ;;  %v2004_v63 = vld [vmem:[%s3295_s9 + $0x48] sm:$0xff] }
0x225e   :  { %1698 = vrot.lane.b32.xlu1 %v1696_v53, %s2801_s1 }
0x22d0   :  { %v1699_v1 = vpop.permute.xlu1 %1698 }
0x22d1   :  { %v1701_v27 = vadd.f32 %v1699_v1, %v1691_v0  ;;  %v2005_v0 = vld [vmem:[%s3295_s9 + $0x50] sm:$0xff]  ;;  %v2006_v1 = vld [vmem:[%s3295_s9 + $0x58] sm:$0xff] }
0x22d3   :  { %2779 = vtanh.f32 %v1701_v27 }
0x22dd   :  { %v2780_v2 = vpop.eup %2779 }
0x22de   :  { %1704 = vrot.lane.b32.xlu0 %v2780_v2, %s2800_s3  ;;  %v2007_v2 = vld [vmem:[%s3295_s9 + $0x60] sm:$0xff] }
0x2350   :  { %v1705_v5 = vpop.permute.xlu0 %1704 }
0x2351   :  { %v1707_v32 = vmul.f32 %v2778_v62, %v1705_v5  ;;  %v2003_v62 = vld [vmem:[%s3295_s9 + $0x40] sm:$0xff]  ;;  %v2008_v5 = vld [vmem:[%s3295_s9 + $0x68] sm:$0xff] }
0x2352   :  { %v2653_v53 = vpack.c.bf16 %v2004_v63, %v2003_v62 }
0x2353   :  { %1709 = vrot.lane.b32.xlu1 %v1707_v32, %s2801_s1  ;;  %v2659_v32 = vpack.c.bf16 %v2008_v5, %v2007_v2 }
0x23c5   :  { %v1710_v6 = vpop.permute.xlu1 %1709 }
0x23c6   :  { %2467 = vmatmul.mubr.msk.f32.vlgmr.msra.gmra.mrb[30].mxu0 %vm189_vm2, %v1710_v6 }
0x23c7   :  { %2488 = vmatprep.mubr.msk.f32.mxu0 %vm2798_vm1, %v2799_v4  ;;  %2636 = vmatpush3.bf16.msra.mxu0 %v2635_v43 }
0x23c8   :  { %2637 = vmatprep.subr.bf16.mxu0 %v2797_v3 }
0x23cb   :  { %2639 = vmatpush3.bf16.msra.mxu0 %v2638_v33 }
0x2499   :  { %v1779_v9 = vpop.f32.mrb[30].mxu0 }
0x249a   :  { %v1783_v8 = vadd.f32 %v1779_v9, %v1101_v37  ;;  %v2468_v10 = vpop.f32.mrb[31].mxu0  ;;  %v2009_v37 = vld [vmem:[%s3295_s9 + $0x70] sm:$0xff]  ;;  %v2010_v9 = vld [vmem:[%s3295_s9 + $0x78] sm:$0xff] }
0x249b   :  { %v2141_v10 = vld [vmem:[%s3296_s8] ss:$0 sm:$0xff] }
0x249c   :  { %2781 = vtanh.f32 %v1783_v8  ;;  %v2138_v12 = vmul.f32 -1.442695, %v1783_v8  ;;  %v2662_v8 = vpack.c.bf16 %v2010_v9, %v2009_v37 }
0x249e   :  { %2783 = vpow2.f32 %v2138_v12 }
0x24a6   :  { %v2782_v11 = vpop.eup %2781 }
0x24a7   :  { %1793 = vrot.lane.b32.xlu0 %v2782_v11, %s2800_s3 }
0x24a8   :  { %v2784_v14 = vpop.eup %2783 }
0x24a9   :  { %v1787_v13 = vadd.f32 1.0, %v2784_v14 }
0x24ab   :  { %2785 = vrcp.f32 %v1787_v13  ;;  %v2143_v13 = vld [vmem:[%s3297_s10] ss:$0 sm:$0xff] }
0x24b5   :  { %v2786_v15 = vpop.eup %2785 }
0x24b6   :  { %v1791_v17 = vmul.f32 %v2786_v15, %v1701_v27  ;;  %v2656_v27 = vpack.c.bf16 %v2006_v1, %v2005_v0 }
0x2519   :  { %v1794_v16 = vpop.permute.xlu0 %1793 }
0x251a   :  { %v1796_v28 = vmul.f32 %v2786_v15, %v1794_v16 }
0x251c   :  { %1798 = vrot.lane.b32.xlu1 %v1796_v28, %s2801_s1 }
0x258e   :  { %v1799_v18 = vpop.permute.xlu1 %1798 }
0x258f   :  { %v1801_v50 = vadd.f32 %v1799_v18, %v1791_v17 }
0x2591   :  { %2787 = vtanh.f32 %v1801_v50 }
0x259b   :  { %v2788_v19 = vpop.eup %2787 }
0x259c   :  { %1804 = vrot.lane.b32.xlu0 %v2788_v19, %s2800_s3 }
0x260e   :  { %v1805_v20 = vpop.permute.xlu0 %1804 }
0x260f   :  { %v1807_v21 = vmul.f32 %v2786_v15, %v1805_v20 }
0x2611   :  { %1809 = vrot.lane.b32.xlu1 %v1807_v21, %s2801_s1 }
0x2683   :  { %v1810_v22 = vpop.permute.xlu1 %1809 }
0x2684   :  { %2478 = vmatmul.mubr.msk.f32.vlgmr.msra.gmra.mrb[14].mxu1 %vm189_vm2, %v1810_v22 }
0x2685   :  { %2523 = vmatprep.mubr.msk.f32.mxu1 %vm2798_vm1, %v2799_v4  ;;  %2642 = vmatpush3.bf16.msra.mxu1 %v2641_v47 }
0x2686   :  { %2643 = vmatprep.subr.bf16.mxu1 %v2797_v3 }
0x2689   :  { %2645 = vmatpush3.bf16.msra.mxu1 %v2644_v54 }
0x268a   :  { %2646 = vmatprep.subr.bf16.mxu1 %v2797_v3 }
0x268d   :  { %2648 = vmatpush3.bf16.msra.mxu1 %v2647_v57 }
0x268e   :  { %2649 = vmatprep.subr.bf16.mxu1 %v2797_v3 }
0x2691   :  { %2651 = vmatpush3.bf16.msra.mxu1 %v2650_v30 }
0x2692   :  { %2652 = vmatprep.subr.bf16.mxu1 %v2797_v3 }
0x2695   :  { %2654 = vmatpush3.bf16.msra.mxu1 %v2653_v53 }
0x2696   :  { %2655 = vmatprep.subr.bf16.mxu1 %v2797_v3 }
0x2699   :  { %2657 = vmatpush3.bf16.msra.mxu1 %v2656_v27 }
0x269a   :  { %2658 = vmatprep.subr.bf16.mxu1 %v2797_v3 }
0x269d   :  { %2660 = vmatpush3.bf16.msra.mxu1 %v2659_v32 }
0x269e   :  { %2661 = vmatprep.subr.bf16.mxu1 %v2797_v3 }
0x26a1   :  { %2663 = vmatpush3.bf16.msra.mxu1 %v2662_v8 }
0x2757   :  { %v1879_v36 = vpop.f32.mrb[14].mxu1 }
0x2758   :  { %v1883_v25 = vadd.f32 %v1879_v36, %v1106_v23  ;;  %v2479_v26 = vpop.f32.mrb[15].mxu1 }
0x275a   :  { %2789 = vtanh.f32 %v1883_v25  ;;  %v2140_v52 = vmul.f32 -1.442695, %v1883_v25 }
0x275c   :  { %2791 = vpow2.f32 %v2140_v52 }
0x2764   :  { %v2790_v29 = vpop.eup %2789 }
0x2765   :  { %1893 = vrot.lane.b32.xlu0 %v2790_v29, %s2800_s3 }
0x2766   :  { %v2792_v31 = vpop.eup %2791 }
0x2767   :  { %v1887_v35 = vadd.f32 1.0, %v2792_v31 }
0x2769   :  { %2793 = vrcp.f32 %v1887_v35 }
0x2773   :  { %v2794_v7 = vpop.eup %2793 }
0x2774   :  { %v1891_v4 = vmul.f32 %v2794_v7, %v1801_v50 }
0x27d7   :  { %v1894_v39 = vpop.permute.xlu0 %1893 }
0x27d8   :  { %v1896_v40 = vmul.f32 %v2794_v7, %v1894_v39 }
0x27da   :  { %1898 = vrot.lane.b32.xlu1 %v1896_v40, %s2801_s1 }
0x284c   :  { %v1899_v34 = vpop.permute.xlu1 %1898 }
0x284d   :  { %v1901_v60 = vadd.f32 %v1899_v34, %v1891_v4 }
0x284f   :  { %2795 = vtanh.f32 %v1901_v60 }
0x2859   :  { %v2796_v24 = vpop.eup %2795 }
0x285a   :  { %1904 = vrot.lane.b32.xlu0 %v2796_v24, %s2800_s3 }
0x28cc   :  { %v1905_v49 = vpop.permute.xlu0 %1904 }
0x28cd   :  { %v1907_v61 = vmul.f32 %v2794_v7, %v1905_v49 }
0x28cf   :  { %1920 = vrot.lane.b32.xlu1 %v1907_v61, %s2801_s1 }
0x2941   :  { %v1921_v6 = vpop.permute.xlu1 %1920 }
0x2942   :  { %2489 = vmatmul.mubr.msk.f32.vlgmr.msra.gmra.mrb[32].mxu0 %vm189_vm2, %v1921_v6 }
0x2a15   :  { %v1990_v11 = vpop.f32.mrb[32].mxu0 }
0x2a16   :  { %v1991_v12 = vadd.f32 %v2141_v10, %v1990_v11  ;;  %v2490_v3 = vpop.f32.mrb[33].mxu0 }
0x2a18   :  { %v1994_v14 = vmax.f32 %v1991_v12, 0.0 }
0x2a1a   :  { %2524 = vmatmul.mubr.f32.vlgmr.msra.gmra.mrb[16].mxu1 %v1994_v14 }
0x2aed   :  { %v2084_v15 = vpop.f32.mrb[16].mxu1 }
0x2aee   :  { %v2085_v16 = vadd.f32 %v2143_v13, %v2084_v15  ;;  %v2525_v28 = vpop.f32.mrb[17].mxu1 }
0x2af0   :  { %2088 = vst [vmem:[%s3298_s11] sm:$0xff] %v2085_v16 }

</bundles_post_ra>
